<compile_context>
chip_gen: v6e
topology: v6e:2x2x1
jax: 0.10.0
libtpu: 0.0.40
codegen_flags: <defaults>
</compile_context>

<pallas_src>
import functools

import jax
import jax.numpy as jnp
from jax import lax
from jax.experimental import pallas as pl
from jax.experimental.pallas import tpu as pltpu


def _select_matmul_exact(a, sel):
    """a @ sel where sel is a 0/1 selection matrix, exact to f32 precision
    regardless of the MXU multiply precision: the f32 LHS is split into
    bf16-exact chunks (sel entries 0.0/1.0 are exact in bf16) and accumulated
    in f32.  Cost: 3 tiny MXU matmuls, negligible for this problem size."""
    hi = a.astype(jnp.bfloat16).astype(jnp.float32)
    r1 = a - hi
    mid = r1.astype(jnp.bfloat16).astype(jnp.float32)
    lo = r1 - mid
    out = jnp.dot(hi, sel, preferred_element_type=jnp.float32)
    out = out + jnp.dot(mid, sel, preferred_element_type=jnp.float32)
    out = out + jnp.dot(lo, sel, preferred_element_type=jnp.float32)
    return out


def _dilconv_kernel(x_ref, wdw_ref, wpw_ref, bias_ref, o_ref, xpad_ref, *,
                    C_in, C_out, K, dil, stride, pad, H, W, Hd, Wd, Ho, Wo):
    """Fused ReLU + depthwise dilated conv + stride subsample + 1x1 conv + BN.

    x_ref    : (N, C_in, H, W)       VMEM, raw input (unpadded)
    wdw_ref  : (C_in*K*K,)           SMEM, depthwise weights flat (c, kh, kw)
    wpw_ref  : (C_out*C_in,)         SMEM, pointwise weights * BN scale, (co, ci)
    bias_ref : (C_out,)              SMEM, folded BN bias = beta - mean*scale
    o_ref    : (N, C_out, Ho*Wo)     VMEM, lane-dense flattened-spatial output
    xpad_ref : (N, C_in, Hp, Wp)     VMEM scratch, zero-padded ReLU'd input
    """
    N = x_ref.shape[0]
    HWd = Hd * Wd
    HWo = Ho * Wo

    # ---- ReLU + zero-padding, fully in-kernel (no wrapper jnp.pad) ----
    xpad_ref[...] = jnp.zeros(xpad_ref.shape, jnp.float32)
    xpad_ref[:, :, pad:pad + H, pad:pad + W] = jnp.maximum(
        x_ref[...].astype(jnp.float32), 0.0)

    # ---- in-kernel stride-selection matrix over the flattened spatial axis:
    #      sel[p, q] = 1  iff  p == (q // Wo)*stride*Wd + (q % Wo)*stride ----
    if stride > 1:
        p = lax.broadcasted_iota(jnp.int32, (HWd, HWo), 0)
        q = lax.broadcasted_iota(jnp.int32, (HWd, HWo), 1)
        src = (q // Wo) * (stride * Wd) + (q % Wo) * stride
        sel = (p == src).astype(jnp.float32)

    # ---- depthwise dilated conv (dense), vectorized over the batch dim;
    #      K*K statically-unrolled window FMAs against SMEM scalar weights ----
    dw = []
    for c in range(C_in):
        acc = jnp.zeros((N, Hd, Wd), jnp.float32)
        for kh in range(K):
            for kw in range(K):
                h0, w0 = kh * dil, kw * dil
                win = xpad_ref[:, c, h0:h0 + Hd, w0:w0 + Wd]
                acc = acc + win * wdw_ref[c * K * K + kh * K + kw]
        acc = acc.reshape(N, HWd)                    # lane-dense flatten
        if stride > 1:
            acc = _select_matmul_exact(acc, sel)     # keep only strided outputs
        dw.append(acc)

    # ---- pointwise 1x1 (BN scale pre-folded into weights) + BN bias; store
    #      lane-dense (N, C_out, Ho*Wo) ----
    # TODO(synk): at real DARTS widths (C >= 32), restructure this stage as an
    # (Ho*Wo, C_in) x (C_in, C_out) MXU matmul; at C=4 VPU FMAs are the right call.
    for co in range(C_out):
        acc = jnp.zeros((N, HWo), jnp.float32)
        for ci in range(C_in):
            acc = acc + dw[ci] * wpw_ref[co * C_in + ci]
        o_ref[:, co, :] = (acc + bias_ref[co]).astype(o_ref.dtype)


def dil_conv_forward(x, w_dw, w_pw, bn_gamma, bn_beta, bn_mean, bn_var, *,
                     stride, padding, dilation, eps=1e-5):
    """Equivalent of DilConv(...).forward(x) in eval mode, NCHW layout.

    x    : (N, C_in, H, W)
    w_dw : (C_in, 1, K, K)      depthwise conv weight (PyTorch layout)
    w_pw : (C_out, C_in, 1, 1)  pointwise conv weight (PyTorch layout)
    bn_* : (C_out,)             BatchNorm2d affine params + running stats
    """
    N, C_in, H, W = x.shape
    C_out = w_pw.shape[0]
    K = w_dw.shape[-1]

    Hp, Wp = H + 2 * padding, W + 2 * padding
    Hd, Wd = Hp - dilation * (K - 1), Wp - dilation * (K - 1)   # dense output dims
    assert Hd > 0 and Wd > 0, "kernel/dilation too large for padded input"
    Ho = (Hd - 1) // stride + 1                                 # PyTorch size rule
    Wo = (Wd - 1) // stride + 1

    # Fold eval-mode BatchNorm: scale goes into the pointwise weights, bias is
    # added in-kernel at the store (tiny parameter-only prep, not activation path).
    scale = (bn_gamma.astype(jnp.float32)
             * jax.lax.rsqrt(bn_var.astype(jnp.float32) + eps))
    bias = bn_beta.astype(jnp.float32) - bn_mean.astype(jnp.float32) * scale
    wdw_flat = w_dw.reshape(C_in * K * K).astype(jnp.float32)              # (c,kh,kw)
    wpw_fold = (w_pw.reshape(C_out, C_in).astype(jnp.float32)
                * scale[:, None]).reshape(C_out * C_in)                    # (co,ci)

    kernel = functools.partial(
        _dilconv_kernel, C_in=C_in, C_out=C_out, K=K, dil=dilation,
        stride=stride, pad=padding, H=H, W=W, Hd=Hd, Wd=Wd, Ho=Ho, Wo=Wo)

    # Single grid step: the whole working set is tens of KB, which fits VMEM on
    # every TPU generation, so one step amortizes launch/DMA latency.
    # TODO(synk): on v7x, batch-parallel grid over the 2 TensorCores (or fusing
    # more of the surrounding DARTS cell per call) is the next lever once the
    # compute phase becomes visible in a profile.
    out_flat = pl.pallas_call(
        kernel,
        out_shape=jax.ShapeDtypeStruct((N, C_out, Ho * Wo), x.dtype),
        in_specs=[
            pl.BlockSpec(memory_space=pltpu.MemorySpace.VMEM),   # x
            pl.BlockSpec(memory_space=pltpu.MemorySpace.SMEM),   # depthwise w
            pl.BlockSpec(memory_space=pltpu.MemorySpace.SMEM),   # pointwise w * scale
            pl.BlockSpec(memory_space=pltpu.MemorySpace.SMEM),   # BN bias
        ],
        out_specs=pl.BlockSpec(memory_space=pltpu.MemorySpace.VMEM),
        scratch_shapes=[pltpu.VMEM((N, C_in, Hp, Wp), jnp.float32)],
    )(x, wdw_flat, wpw_fold, bias)

    # Trailing-dim split reshape: layout-preserving, no data movement.
    return out_flat.reshape(N, C_out, Ho, Wo)


if __name__ == "__main__":
    key = jax.random.PRNGKey(0)
    k1, k2, k3, k4, k5, k6, k7 = jax.random.split(key, 7)

    # Small shapes consistent with the module: DilConv(4, 4, 3, stride, 2, 2)
    N, C_in, C_out, H, W = 2, 4, 4, 16, 16
    K, padding, dilation = 3, 2, 2
    eps = 1e-5

    x = jax.random.normal(k1, (N, C_in, H, W), dtype=jnp.float32)
    w_dw = 0.3 * jax.random.normal(k2, (C_in, 1, K, K), dtype=jnp.float32)
    w_pw = 0.3 * jax.random.normal(k3, (C_out, C_in, 1, 1), dtype=jnp.float32)
    gamma = 1.0 + 0.1 * jax.random.normal(k4, (C_out,), dtype=jnp.float32)
    beta = 0.1 * jax.random.normal(k5, (C_out,), dtype=jnp.float32)
    r_mean = 0.1 * jax.random.normal(k6, (C_out,), dtype=jnp.float32)
    r_var = jax.random.uniform(k7, (C_out,), dtype=jnp.float32,
                               minval=0.5, maxval=1.5)

    def reference(x, stride):
        xr = jnp.maximum(x, 0.0)
        y = lax.conv_general_dilated(
            xr, w_dw, window_strides=(stride, stride),
            padding=((padding, padding), (padding, padding)),
            rhs_dilation=(dilation, dilation),
            dimension_numbers=("NCHW", "OIHW", "NCHW"),
            feature_group_count=C_in, precision=lax.Precision.HIGHEST)
        y = lax.conv_general_dilated(
            y, w_pw, window_strides=(1, 1), padding=((0, 0), (0, 0)),
            dimension_numbers=("NCHW", "OIHW", "NCHW"),
            precision=lax.Precision.HIGHEST)
        inv = lax.rsqrt(r_var + eps)
        return ((y - r_mean[None, :, None, None]) * inv[None, :, None, None]
                * gamma[None, :, None, None] + beta[None, :, None, None])

    for stride in (1, 2):
        out = jax.block_until_ready(dil_conv_forward(
            x, w_dw, w_pw, gamma, beta, r_mean, r_var,
            stride=stride, padding=padding, dilation=dilation, eps=eps))
        ref = reference(x, stride)
        assert out.shape == ref.shape and out.dtype == ref.dtype, (out.shape, ref.shape)
        max_err = float(jnp.max(jnp.abs(out - ref)))
        assert max_err < 1e-4, f"stride={stride} max_err={max_err}"

    print("KERNEL_OK")
</pallas_src>

<mosaic_0001>
module attributes {stable_mosaic.version = 11 : i64} {
  func.func @_dilconv_kernel(%arg0: memref<2x4x16x16xf32, #tpu.memory_space<vmem>>, %arg1: memref<36xf32, #tpu.memory_space<smem>>, %arg2: memref<16xf32, #tpu.memory_space<smem>>, %arg3: memref<4xf32, #tpu.memory_space<smem>>, %arg4: memref<2x4x256xf32, #tpu.memory_space<vmem>>, %arg5: memref<2x4x20x20xf32, #tpu.memory_space<vmem>>) attributes {dimension_semantics = [], scalar_prefetch = 0 : i64, scratch_operands = 1 : i64, tpu.core_type = #tpu.core_type<tc>} {
    %cst = arith.constant 0.000000e+00 : f32
    %0 = vector.broadcast %cst : f32 to vector<2x4x20x20xf32>
    %c0 = arith.constant 0 : index
    %c0_0 = arith.constant 0 : index
    %c0_1 = arith.constant 0 : index
    %c0_2 = arith.constant 0 : index
    %1 = vector.load %arg5[%c0, %c0_0, %c0_1, %c0_2] : memref<2x4x20x20xf32, #tpu.memory_space<vmem>>, vector<2x4x20x20xf32>
    tpu.vector_store %arg5[%c0, %c0_0, %c0_1, %c0_2], %0 {strides = array<i32>} : memref<2x4x20x20xf32, #tpu.memory_space<vmem>>, vector<2x4x20x20xf32>,
    %c0_3 = arith.constant 0 : index
    %c0_4 = arith.constant 0 : index
    %c0_5 = arith.constant 0 : index
    %c0_6 = arith.constant 0 : index
    %2 = vector.load %arg0[%c0_3, %c0_4, %c0_5, %c0_6] : memref<2x4x16x16xf32, #tpu.memory_space<vmem>>, vector<2x4x16x16xf32>
    %cst_7 = arith.constant 0.000000e+00 : f32
    %3 = vector.broadcast %cst_7 : f32 to vector<2x4x16x16xf32>
    %4 = arith.maximumf %2, %3 : vector<2x4x16x16xf32>
    %c0_8 = arith.constant 0 : index
    %c0_9 = arith.constant 0 : index
    %c2 = arith.constant 2 : index
    %c2_10 = arith.constant 2 : index
    %5 = vector.load %arg5[%c0_8, %c0_9, %c2, %c2_10] : memref<2x4x20x20xf32, #tpu.memory_space<vmem>>, vector<2x4x16x16xf32>
    tpu.vector_store %arg5[%c0_8, %c0_9, %c2, %c2_10], %4 {strides = array<i32>} : memref<2x4x20x20xf32, #tpu.memory_space<vmem>>, vector<2x4x16x16xf32>,
    %cst_11 = arith.constant 0.000000e+00 : f32
    %6 = vector.broadcast %cst_11 : f32 to vector<2x16x16xf32>
    %c0_12 = arith.constant 0 : index
    %c0_13 = arith.constant 0 : index
    %c0_14 = arith.constant 0 : index
    %c0_15 = arith.constant 0 : index
    %7 = vector.load %arg5[%c0_12, %c0_13, %c0_14, %c0_15] : memref<2x4x20x20xf32, #tpu.memory_space<vmem>>, vector<2x1x16x16xf32>
    %8 = vector.shape_cast %7 : vector<2x1x16x16xf32> to vector<2x16x16xf32>
    %c0_16 = arith.constant 0 : index
    %9 = memref.load %arg1[%c0_16] : memref<36xf32, #tpu.memory_space<smem>>
    %10 = vector.broadcast %9 : f32 to vector<2x16x16xf32>
    %11 = arith.mulf %8, %10 : vector<2x16x16xf32>
    %12 = arith.addf %6, %11 : vector<2x16x16xf32>
    %c0_17 = arith.constant 0 : index
    %c0_18 = arith.constant 0 : index
    %c0_19 = arith.constant 0 : index
    %c2_20 = arith.constant 2 : index
    %13 = vector.load %arg5[%c0_17, %c0_18, %c0_19, %c2_20] : memref<2x4x20x20xf32, #tpu.memory_space<vmem>>, vector<2x1x16x16xf32>
    %14 = vector.shape_cast %13 : vector<2x1x16x16xf32> to vector<2x16x16xf32>
    %c1 = arith.constant 1 : index
    %15 = memref.load %arg1[%c1] : memref<36xf32, #tpu.memory_space<smem>>
    %16 = vector.broadcast %15 : f32 to vector<2x16x16xf32>
    %17 = arith.mulf %14, %16 : vector<2x16x16xf32>
    %18 = arith.addf %12, %17 : vector<2x16x16xf32>
    %c0_21 = arith.constant 0 : index
    %c0_22 = arith.constant 0 : index
    %c0_23 = arith.constant 0 : index
    %c4 = arith.constant 4 : index
    %19 = vector.load %arg5[%c0_21, %c0_22, %c0_23, %c4] : memref<2x4x20x20xf32, #tpu.memory_space<vmem>>, vector<2x1x16x16xf32>
    %20 = vector.shape_cast %19 : vector<2x1x16x16xf32> to vector<2x16x16xf32>
    %c2_24 = arith.constant 2 : index
    %21 = memref.load %arg1[%c2_24] : memref<36xf32, #tpu.memory_space<smem>>
    %22 = vector.broadcast %21 : f32 to vector<2x16x16xf32>
    %23 = arith.mulf %20, %22 : vector<2x16x16xf32>
    %24 = arith.addf %18, %23 : vector<2x16x16xf32>
    %c0_25 = arith.constant 0 : index
    %c0_26 = arith.constant 0 : index
    %c2_27 = arith.constant 2 : index
    %c0_28 = arith.constant 0 : index
    %25 = vector.load %arg5[%c0_25, %c0_26, %c2_27, %c0_28] : memref<2x4x20x20xf32, #tpu.memory_space<vmem>>, vector<2x1x16x16xf32>
    %26 = vector.shape_cast %25 : vector<2x1x16x16xf32> to vector<2x16x16xf32>
    %c3 = arith.constant 3 : index
    %27 = memref.load %arg1[%c3] : memref<36xf32, #tpu.memory_space<smem>>
    %28 = vector.broadcast %27 : f32 to vector<2x16x16xf32>
    %29 = arith.mulf %26, %28 : vector<2x16x16xf32>
    %30 = arith.addf %24, %29 : vector<2x16x16xf32>
    %c0_29 = arith.constant 0 : index
    %c0_30 = arith.constant 0 : index
    %c2_31 = arith.constant 2 : index
    %c2_32 = arith.constant 2 : index
    %31 = vector.load %arg5[%c0_29, %c0_30, %c2_31, %c2_32] : memref<2x4x20x20xf32, #tpu.memory_space<vmem>>, vector<2x1x16x16xf32>
    %32 = vector.shape_cast %31 : vector<2x1x16x16xf32> to vector<2x16x16xf32>
    %c4_33 = arith.constant 4 : index
    %33 = memref.load %arg1[%c4_33] : memref<36xf32, #tpu.memory_space<smem>>
    %34 = vector.broadcast %33 : f32 to vector<2x16x16xf32>
    %35 = arith.mulf %32, %34 : vector<2x16x16xf32>
    %36 = arith.addf %30, %35 : vector<2x16x16xf32>
    %c0_34 = arith.constant 0 : index
    %c0_35 = arith.constant 0 : index
    %c2_36 = arith.constant 2 : index
    %c4_37 = arith.constant 4 : index
    %37 = vector.load %arg5[%c0_34, %c0_35, %c2_36, %c4_37] : memref<2x4x20x20xf32, #tpu.memory_space<vmem>>, vector<2x1x16x16xf32>
    %38 = vector.shape_cast %37 : vector<2x1x16x16xf32> to vector<2x16x16xf32>
    %c5 = arith.constant 5 : index
    %39 = memref.load %arg1[%c5] : memref<36xf32, #tpu.memory_space<smem>>
    %40 = vector.broadcast %39 : f32 to vector<2x16x16xf32>
    %41 = arith.mulf %38, %40 : vector<2x16x16xf32>
    %42 = arith.addf %36, %41 : vector<2x16x16xf32>
    %c0_38 = arith.constant 0 : index
    %c0_39 = arith.constant 0 : index
    %c4_40 = arith.constant 4 : index
    %c0_41 = arith.constant 0 : index
    %43 = vector.load %arg5[%c0_38, %c0_39, %c4_40, %c0_41] : memref<2x4x20x20xf32, #tpu.memory_space<vmem>>, vector<2x1x16x16xf32>
    %44 = vector.shape_cast %43 : vector<2x1x16x16xf32> to vector<2x16x16xf32>
    %c6 = arith.constant 6 : index
    %45 = memref.load %arg1[%c6] : memref<36xf32, #tpu.memory_space<smem>>
    %46 = vector.broadcast %45 : f32 to vector<2x16x16xf32>
    %47 = arith.mulf %44, %46 : vector<2x16x16xf32>
    %48 = arith.addf %42, %47 : vector<2x16x16xf32>
    %c0_42 = arith.constant 0 : index
    %c0_43 = arith.constant 0 : index
    %c4_44 = arith.constant 4 : index
    %c2_45 = arith.constant 2 : index
    %49 = vector.load %arg5[%c0_42, %c0_43, %c4_44, %c2_45] : memref<2x4x20x20xf32, #tpu.memory_space<vmem>>, vector<2x1x16x16xf32>
    %50 = vector.shape_cast %49 : vector<2x1x16x16xf32> to vector<2x16x16xf32>
    %c7 = arith.constant 7 : index
    %51 = memref.load %arg1[%c7] : memref<36xf32, #tpu.memory_space<smem>>
    %52 = vector.broadcast %51 : f32 to vector<2x16x16xf32>
    %53 = arith.mulf %50, %52 : vector<2x16x16xf32>
    %54 = arith.addf %48, %53 : vector<2x16x16xf32>
    %c0_46 = arith.constant 0 : index
    %c0_47 = arith.constant 0 : index
    %c4_48 = arith.constant 4 : index
    %c4_49 = arith.constant 4 : index
    %55 = vector.load %arg5[%c0_46, %c0_47, %c4_48, %c4_49] : memref<2x4x20x20xf32, #tpu.memory_space<vmem>>, vector<2x1x16x16xf32>
    %56 = vector.shape_cast %55 : vector<2x1x16x16xf32> to vector<2x16x16xf32>
    %c8 = arith.constant 8 : index
    %57 = memref.load %arg1[%c8] : memref<36xf32, #tpu.memory_space<smem>>
    %58 = vector.broadcast %57 : f32 to vector<2x16x16xf32>
    %59 = arith.mulf %56, %58 : vector<2x16x16xf32>
    %60 = arith.addf %54, %59 : vector<2x16x16xf32>
    %61 = vector.shape_cast %60 : vector<2x16x16xf32> to vector<2x256xf32>
    %cst_50 = arith.constant 0.000000e+00 : f32
    %62 = vector.broadcast %cst_50 : f32 to vector<2x16x16xf32>
    %c0_51 = arith.constant 0 : index
    %c1_52 = arith.constant 1 : index
    %c0_53 = arith.constant 0 : index
    %c0_54 = arith.constant 0 : index
    %63 = vector.load %arg5[%c0_51, %c1_52, %c0_53, %c0_54] : memref<2x4x20x20xf32, #tpu.memory_space<vmem>>, vector<2x1x16x16xf32>
    %64 = vector.shape_cast %63 : vector<2x1x16x16xf32> to vector<2x16x16xf32>
    %c9 = arith.constant 9 : index
    %65 = memref.load %arg1[%c9] : memref<36xf32, #tpu.memory_space<smem>>
    %66 = vector.broadcast %65 : f32 to vector<2x16x16xf32>
    %67 = arith.mulf %64, %66 : vector<2x16x16xf32>
    %68 = arith.addf %62, %67 : vector<2x16x16xf32>
    %c0_55 = arith.constant 0 : index
    %c1_56 = arith.constant 1 : index
    %c0_57 = arith.constant 0 : index
    %c2_58 = arith.constant 2 : index
    %69 = vector.load %arg5[%c0_55, %c1_56, %c0_57, %c2_58] : memref<2x4x20x20xf32, #tpu.memory_space<vmem>>, vector<2x1x16x16xf32>
    %70 = vector.shape_cast %69 : vector<2x1x16x16xf32> to vector<2x16x16xf32>
    %c10 = arith.constant 10 : index
    %71 = memref.load %arg1[%c10] : memref<36xf32, #tpu.memory_space<smem>>
    %72 = vector.broadcast %71 : f32 to vector<2x16x16xf32>
    %73 = arith.mulf %70, %72 : vector<2x16x16xf32>
    %74 = arith.addf %68, %73 : vector<2x16x16xf32>
    %c0_59 = arith.constant 0 : index
    %c1_60 = arith.constant 1 : index
    %c0_61 = arith.constant 0 : index
    %c4_62 = arith.constant 4 : index
    %75 = vector.load %arg5[%c0_59, %c1_60, %c0_61, %c4_62] : memref<2x4x20x20xf32, #tpu.memory_space<vmem>>, vector<2x1x16x16xf32>
    %76 = vector.shape_cast %75 : vector<2x1x16x16xf32> to vector<2x16x16xf32>
    %c11 = arith.constant 11 : index
    %77 = memref.load %arg1[%c11] : memref<36xf32, #tpu.memory_space<smem>>
    %78 = vector.broadcast %77 : f32 to vector<2x16x16xf32>
    %79 = arith.mulf %76, %78 : vector<2x16x16xf32>
    %80 = arith.addf %74, %79 : vector<2x16x16xf32>
    %c0_63 = arith.constant 0 : index
    %c1_64 = arith.constant 1 : index
    %c2_65 = arith.constant 2 : index
    %c0_66 = arith.constant 0 : index
    %81 = vector.load %arg5[%c0_63, %c1_64, %c2_65, %c0_66] : memref<2x4x20x20xf32, #tpu.memory_space<vmem>>, vector<2x1x16x16xf32>
    %82 = vector.shape_cast %81 : vector<2x1x16x16xf32> to vector<2x16x16xf32>
    %c12 = arith.constant 12 : index
    %83 = memref.load %arg1[%c12] : memref<36xf32, #tpu.memory_space<smem>>
    %84 = vector.broadcast %83 : f32 to vector<2x16x16xf32>
    %85 = arith.mulf %82, %84 : vector<2x16x16xf32>
    %86 = arith.addf %80, %85 : vector<2x16x16xf32>
    %c0_67 = arith.constant 0 : index
    %c1_68 = arith.constant 1 : index
    %c2_69 = arith.constant 2 : index
    %c2_70 = arith.constant 2 : index
    %87 = vector.load %arg5[%c0_67, %c1_68, %c2_69, %c2_70] : memref<2x4x20x20xf32, #tpu.memory_space<vmem>>, vector<2x1x16x16xf32>
    %88 = vector.shape_cast %87 : vector<2x1x16x16xf32> to vector<2x16x16xf32>
    %c13 = arith.constant 13 : index
    %89 = memref.load %arg1[%c13] : memref<36xf32, #tpu.memory_space<smem>>
    %90 = vector.broadcast %89 : f32 to vector<2x16x16xf32>
    %91 = arith.mulf %88, %90 : vector<2x16x16xf32>
    %92 = arith.addf %86, %91 : vector<2x16x16xf32>
    %c0_71 = arith.constant 0 : index
    %c1_72 = arith.constant 1 : index
    %c2_73 = arith.constant 2 : index
    %c4_74 = arith.constant 4 : index
    %93 = vector.load %arg5[%c0_71, %c1_72, %c2_73, %c4_74] : memref<2x4x20x20xf32, #tpu.memory_space<vmem>>, vector<2x1x16x16xf32>
    %94 = vector.shape_cast %93 : vector<2x1x16x16xf32> to vector<2x16x16xf32>
    %c14 = arith.constant 14 : index
    %95 = memref.load %arg1[%c14] : memref<36xf32, #tpu.memory_space<smem>>
    %96 = vector.broadcast %95 : f32 to vector<2x16x16xf32>
    %97 = arith.mulf %94, %96 : vector<2x16x16xf32>
    %98 = arith.addf %92, %97 : vector<2x16x16xf32>
    %c0_75 = arith.constant 0 : index
    %c1_76 = arith.constant 1 : index
    %c4_77 = arith.constant 4 : index
    %c0_78 = arith.constant 0 : index
    %99 = vector.load %arg5[%c0_75, %c1_76, %c4_77, %c0_78] : memref<2x4x20x20xf32, #tpu.memory_space<vmem>>, vector<2x1x16x16xf32>
    %100 = vector.shape_cast %99 : vector<2x1x16x16xf32> to vector<2x16x16xf32>
    %c15 = arith.constant 15 : index
    %101 = memref.load %arg1[%c15] : memref<36xf32, #tpu.memory_space<smem>>
    %102 = vector.broadcast %101 : f32 to vector<2x16x16xf32>
    %103 = arith.mulf %100, %102 : vector<2x16x16xf32>
    %104 = arith.addf %98, %103 : vector<2x16x16xf32>
    %c0_79 = arith.constant 0 : index
    %c1_80 = arith.constant 1 : index
    %c4_81 = arith.constant 4 : index
    %c2_82 = arith.constant 2 : index
    %105 = vector.load %arg5[%c0_79, %c1_80, %c4_81, %c2_82] : memref<2x4x20x20xf32, #tpu.memory_space<vmem>>, vector<2x1x16x16xf32>
    %106 = vector.shape_cast %105 : vector<2x1x16x16xf32> to vector<2x16x16xf32>
    %c16 = arith.constant 16 : index
    %107 = memref.load %arg1[%c16] : memref<36xf32, #tpu.memory_space<smem>>
    %108 = vector.broadcast %107 : f32 to vector<2x16x16xf32>
    %109 = arith.mulf %106, %108 : vector<2x16x16xf32>
    %110 = arith.addf %104, %109 : vector<2x16x16xf32>
    %c0_83 = arith.constant 0 : index
    %c1_84 = arith.constant 1 : index
    %c4_85 = arith.constant 4 : index
    %c4_86 = arith.constant 4 : index
    %111 = vector.load %arg5[%c0_83, %c1_84, %c4_85, %c4_86] : memref<2x4x20x20xf32, #tpu.memory_space<vmem>>, vector<2x1x16x16xf32>
    %112 = vector.shape_cast %111 : vector<2x1x16x16xf32> to vector<2x16x16xf32>
    %c17 = arith.constant 17 : index
    %113 = memref.load %arg1[%c17] : memref<36xf32, #tpu.memory_space<smem>>
    %114 = vector.broadcast %113 : f32 to vector<2x16x16xf32>
    %115 = arith.mulf %112, %114 : vector<2x16x16xf32>
    %116 = arith.addf %110, %115 : vector<2x16x16xf32>
    %117 = vector.shape_cast %116 : vector<2x16x16xf32> to vector<2x256xf32>
    %cst_87 = arith.constant 0.000000e+00 : f32
    %118 = vector.broadcast %cst_87 : f32 to vector<2x16x16xf32>
    %c0_88 = arith.constant 0 : index
    %c2_89 = arith.constant 2 : index
    %c0_90 = arith.constant 0 : index
    %c0_91 = arith.constant 0 : index
    %119 = vector.load %arg5[%c0_88, %c2_89, %c0_90, %c0_91] : memref<2x4x20x20xf32, #tpu.memory_space<vmem>>, vector<2x1x16x16xf32>
    %120 = vector.shape_cast %119 : vector<2x1x16x16xf32> to vector<2x16x16xf32>
    %c18 = arith.constant 18 : index
    %121 = memref.load %arg1[%c18] : memref<36xf32, #tpu.memory_space<smem>>
    %122 = vector.broadcast %121 : f32 to vector<2x16x16xf32>
    %123 = arith.mulf %120, %122 : vector<2x16x16xf32>
    %124 = arith.addf %118, %123 : vector<2x16x16xf32>
    %c0_92 = arith.constant 0 : index
    %c2_93 = arith.constant 2 : index
    %c0_94 = arith.constant 0 : index
    %c2_95 = arith.constant 2 : index
    %125 = vector.load %arg5[%c0_92, %c2_93, %c0_94, %c2_95] : memref<2x4x20x20xf32, #tpu.memory_space<vmem>>, vector<2x1x16x16xf32>
    %126 = vector.shape_cast %125 : vector<2x1x16x16xf32> to vector<2x16x16xf32>
    %c19 = arith.constant 19 : index
    %127 = memref.load %arg1[%c19] : memref<36xf32, #tpu.memory_space<smem>>
    %128 = vector.broadcast %127 : f32 to vector<2x16x16xf32>
    %129 = arith.mulf %126, %128 : vector<2x16x16xf32>
    %130 = arith.addf %124, %129 : vector<2x16x16xf32>
    %c0_96 = arith.constant 0 : index
    %c2_97 = arith.constant 2 : index
    %c0_98 = arith.constant 0 : index
    %c4_99 = arith.constant 4 : index
    %131 = vector.load %arg5[%c0_96, %c2_97, %c0_98, %c4_99] : memref<2x4x20x20xf32, #tpu.memory_space<vmem>>, vector<2x1x16x16xf32>
    %132 = vector.shape_cast %131 : vector<2x1x16x16xf32> to vector<2x16x16xf32>
    %c20 = arith.constant 20 : index
    %133 = memref.load %arg1[%c20] : memref<36xf32, #tpu.memory_space<smem>>
    %134 = vector.broadcast %133 : f32 to vector<2x16x16xf32>
    %135 = arith.mulf %132, %134 : vector<2x16x16xf32>
    %136 = arith.addf %130, %135 : vector<2x16x16xf32>
    %c0_100 = arith.constant 0 : index
    %c2_101 = arith.constant 2 : index
    %c2_102 = arith.constant 2 : index
    %c0_103 = arith.constant 0 : index
    %137 = vector.load %arg5[%c0_100, %c2_101, %c2_102, %c0_103] : memref<2x4x20x20xf32, #tpu.memory_space<vmem>>, vector<2x1x16x16xf32>
    %138 = vector.shape_cast %137 : vector<2x1x16x16xf32> to vector<2x16x16xf32>
    %c21 = arith.constant 21 : index
    %139 = memref.load %arg1[%c21] : memref<36xf32, #tpu.memory_space<smem>>
    %140 = vector.broadcast %139 : f32 to vector<2x16x16xf32>
    %141 = arith.mulf %138, %140 : vector<2x16x16xf32>
    %142 = arith.addf %136, %141 : vector<2x16x16xf32>
    %c0_104 = arith.constant 0 : index
    %c2_105 = arith.constant 2 : index
    %c2_106 = arith.constant 2 : index
    %c2_107 = arith.constant 2 : index
    %143 = vector.load %arg5[%c0_104, %c2_105, %c2_106, %c2_107] : memref<2x4x20x20xf32, #tpu.memory_space<vmem>>, vector<2x1x16x16xf32>
    %144 = vector.shape_cast %143 : vector<2x1x16x16xf32> to vector<2x16x16xf32>
    %c22 = arith.constant 22 : index
    %145 = memref.load %arg1[%c22] : memref<36xf32, #tpu.memory_space<smem>>
    %146 = vector.broadcast %145 : f32 to vector<2x16x16xf32>
    %147 = arith.mulf %144, %146 : vector<2x16x16xf32>
    %148 = arith.addf %142, %147 : vector<2x16x16xf32>
    %c0_108 = arith.constant 0 : index
    %c2_109 = arith.constant 2 : index
    %c2_110 = arith.constant 2 : index
    %c4_111 = arith.constant 4 : index
    %149 = vector.load %arg5[%c0_108, %c2_109, %c2_110, %c4_111] : memref<2x4x20x20xf32, #tpu.memory_space<vmem>>, vector<2x1x16x16xf32>
    %150 = vector.shape_cast %149 : vector<2x1x16x16xf32> to vector<2x16x16xf32>
    %c23 = arith.constant 23 : index
    %151 = memref.load %arg1[%c23] : memref<36xf32, #tpu.memory_space<smem>>
    %152 = vector.broadcast %151 : f32 to vector<2x16x16xf32>
    %153 = arith.mulf %150, %152 : vector<2x16x16xf32>
    %154 = arith.addf %148, %153 : vector<2x16x16xf32>
    %c0_112 = arith.constant 0 : index
    %c2_113 = arith.constant 2 : index
    %c4_114 = arith.constant 4 : index
    %c0_115 = arith.constant 0 : index
    %155 = vector.load %arg5[%c0_112, %c2_113, %c4_114, %c0_115] : memref<2x4x20x20xf32, #tpu.memory_space<vmem>>, vector<2x1x16x16xf32>
    %156 = vector.shape_cast %155 : vector<2x1x16x16xf32> to vector<2x16x16xf32>
    %c24 = arith.constant 24 : index
    %157 = memref.load %arg1[%c24] : memref<36xf32, #tpu.memory_space<smem>>
    %158 = vector.broadcast %157 : f32 to vector<2x16x16xf32>
    %159 = arith.mulf %156, %158 : vector<2x16x16xf32>
    %160 = arith.addf %154, %159 : vector<2x16x16xf32>
    %c0_116 = arith.constant 0 : index
    %c2_117 = arith.constant 2 : index
    %c4_118 = arith.constant 4 : index
    %c2_119 = arith.constant 2 : index
    %161 = vector.load %arg5[%c0_116, %c2_117, %c4_118, %c2_119] : memref<2x4x20x20xf32, #tpu.memory_space<vmem>>, vector<2x1x16x16xf32>
    %162 = vector.shape_cast %161 : vector<2x1x16x16xf32> to vector<2x16x16xf32>
    %c25 = arith.constant 25 : index
    %163 = memref.load %arg1[%c25] : memref<36xf32, #tpu.memory_space<smem>>
    %164 = vector.broadcast %163 : f32 to vector<2x16x16xf32>
    %165 = arith.mulf %162, %164 : vector<2x16x16xf32>
    %166 = arith.addf %160, %165 : vector<2x16x16xf32>
    %c0_120 = arith.constant 0 : index
    %c2_121 = arith.constant 2 : index
    %c4_122 = arith.constant 4 : index
    %c4_123 = arith.constant 4 : index
    %167 = vector.load %arg5[%c0_120, %c2_121, %c4_122, %c4_123] : memref<2x4x20x20xf32, #tpu.memory_space<vmem>>, vector<2x1x16x16xf32>
    %168 = vector.shape_cast %167 : vector<2x1x16x16xf32> to vector<2x16x16xf32>
    %c26 = arith.constant 26 : index
    %169 = memref.load %arg1[%c26] : memref<36xf32, #tpu.memory_space<smem>>
    %170 = vector.broadcast %169 : f32 to vector<2x16x16xf32>
    %171 = arith.mulf %168, %170 : vector<2x16x16xf32>
    %172 = arith.addf %166, %171 : vector<2x16x16xf32>
    %173 = vector.shape_cast %172 : vector<2x16x16xf32> to vector<2x256xf32>
    %cst_124 = arith.constant 0.000000e+00 : f32
    %174 = vector.broadcast %cst_124 : f32 to vector<2x16x16xf32>
    %c0_125 = arith.constant 0 : index
    %c3_126 = arith.constant 3 : index
    %c0_127 = arith.constant 0 : index
    %c0_128 = arith.constant 0 : index
    %175 = vector.load %arg5[%c0_125, %c3_126, %c0_127, %c0_128] : memref<2x4x20x20xf32, #tpu.memory_space<vmem>>, vector<2x1x16x16xf32>
    %176 = vector.shape_cast %175 : vector<2x1x16x16xf32> to vector<2x16x16xf32>
    %c27 = arith.constant 27 : index
    %177 = memref.load %arg1[%c27] : memref<36xf32, #tpu.memory_space<smem>>
    %178 = vector.broadcast %177 : f32 to vector<2x16x16xf32>
    %179 = arith.mulf %176, %178 : vector<2x16x16xf32>
    %180 = arith.addf %174, %179 : vector<2x16x16xf32>
    %c0_129 = arith.constant 0 : index
    %c3_130 = arith.constant 3 : index
    %c0_131 = arith.constant 0 : index
    %c2_132 = arith.constant 2 : index
    %181 = vector.load %arg5[%c0_129, %c3_130, %c0_131, %c2_132] : memref<2x4x20x20xf32, #tpu.memory_space<vmem>>, vector<2x1x16x16xf32>
    %182 = vector.shape_cast %181 : vector<2x1x16x16xf32> to vector<2x16x16xf32>
    %c28 = arith.constant 28 : index
    %183 = memref.load %arg1[%c28] : memref<36xf32, #tpu.memory_space<smem>>
    %184 = vector.broadcast %183 : f32 to vector<2x16x16xf32>
    %185 = arith.mulf %182, %184 : vector<2x16x16xf32>
    %186 = arith.addf %180, %185 : vector<2x16x16xf32>
    %c0_133 = arith.constant 0 : index
    %c3_134 = arith.constant 3 : index
    %c0_135 = arith.constant 0 : index
    %c4_136 = arith.constant 4 : index
    %187 = vector.load %arg5[%c0_133, %c3_134, %c0_135, %c4_136] : memref<2x4x20x20xf32, #tpu.memory_space<vmem>>, vector<2x1x16x16xf32>
    %188 = vector.shape_cast %187 : vector<2x1x16x16xf32> to vector<2x16x16xf32>
    %c29 = arith.constant 29 : index
    %189 = memref.load %arg1[%c29] : memref<36xf32, #tpu.memory_space<smem>>
    %190 = vector.broadcast %189 : f32 to vector<2x16x16xf32>
    %191 = arith.mulf %188, %190 : vector<2x16x16xf32>
    %192 = arith.addf %186, %191 : vector<2x16x16xf32>
    %c0_137 = arith.constant 0 : index
    %c3_138 = arith.constant 3 : index
    %c2_139 = arith.constant 2 : index
    %c0_140 = arith.constant 0 : index
    %193 = vector.load %arg5[%c0_137, %c3_138, %c2_139, %c0_140] : memref<2x4x20x20xf32, #tpu.memory_space<vmem>>, vector<2x1x16x16xf32>
    %194 = vector.shape_cast %193 : vector<2x1x16x16xf32> to vector<2x16x16xf32>
    %c30 = arith.constant 30 : index
    %195 = memref.load %arg1[%c30] : memref<36xf32, #tpu.memory_space<smem>>
    %196 = vector.broadcast %195 : f32 to vector<2x16x16xf32>
    %197 = arith.mulf %194, %196 : vector<2x16x16xf32>
    %198 = arith.addf %192, %197 : vector<2x16x16xf32>
    %c0_141 = arith.constant 0 : index
    %c3_142 = arith.constant 3 : index
    %c2_143 = arith.constant 2 : index
    %c2_144 = arith.constant 2 : index
    %199 = vector.load %arg5[%c0_141, %c3_142, %c2_143, %c2_144] : memref<2x4x20x20xf32, #tpu.memory_space<vmem>>, vector<2x1x16x16xf32>
    %200 = vector.shape_cast %199 : vector<2x1x16x16xf32> to vector<2x16x16xf32>
    %c31 = arith.constant 31 : index
    %201 = memref.load %arg1[%c31] : memref<36xf32, #tpu.memory_space<smem>>
    %202 = vector.broadcast %201 : f32 to vector<2x16x16xf32>
    %203 = arith.mulf %200, %202 : vector<2x16x16xf32>
    %204 = arith.addf %198, %203 : vector<2x16x16xf32>
    %c0_145 = arith.constant 0 : index
    %c3_146 = arith.constant 3 : index
    %c2_147 = arith.constant 2 : index
    %c4_148 = arith.constant 4 : index
    %205 = vector.load %arg5[%c0_145, %c3_146, %c2_147, %c4_148] : memref<2x4x20x20xf32, #tpu.memory_space<vmem>>, vector<2x1x16x16xf32>
    %206 = vector.shape_cast %205 : vector<2x1x16x16xf32> to vector<2x16x16xf32>
    %c32 = arith.constant 32 : index
    %207 = memref.load %arg1[%c32] : memref<36xf32, #tpu.memory_space<smem>>
    %208 = vector.broadcast %207 : f32 to vector<2x16x16xf32>
    %209 = arith.mulf %206, %208 : vector<2x16x16xf32>
    %210 = arith.addf %204, %209 : vector<2x16x16xf32>
    %c0_149 = arith.constant 0 : index
    %c3_150 = arith.constant 3 : index
    %c4_151 = arith.constant 4 : index
    %c0_152 = arith.constant 0 : index
    %211 = vector.load %arg5[%c0_149, %c3_150, %c4_151, %c0_152] : memref<2x4x20x20xf32, #tpu.memory_space<vmem>>, vector<2x1x16x16xf32>
    %212 = vector.shape_cast %211 : vector<2x1x16x16xf32> to vector<2x16x16xf32>
    %c33 = arith.constant 33 : index
    %213 = memref.load %arg1[%c33] : memref<36xf32, #tpu.memory_space<smem>>
    %214 = vector.broadcast %213 : f32 to vector<2x16x16xf32>
    %215 = arith.mulf %212, %214 : vector<2x16x16xf32>
    %216 = arith.addf %210, %215 : vector<2x16x16xf32>
    %c0_153 = arith.constant 0 : index
    %c3_154 = arith.constant 3 : index
    %c4_155 = arith.constant 4 : index
    %c2_156 = arith.constant 2 : index
    %217 = vector.load %arg5[%c0_153, %c3_154, %c4_155, %c2_156] : memref<2x4x20x20xf32, #tpu.memory_space<vmem>>, vector<2x1x16x16xf32>
    %218 = vector.shape_cast %217 : vector<2x1x16x16xf32> to vector<2x16x16xf32>
    %c34 = arith.constant 34 : index
    %219 = memref.load %arg1[%c34] : memref<36xf32, #tpu.memory_space<smem>>
    %220 = vector.broadcast %219 : f32 to vector<2x16x16xf32>
    %221 = arith.mulf %218, %220 : vector<2x16x16xf32>
    %222 = arith.addf %216, %221 : vector<2x16x16xf32>
    %c0_157 = arith.constant 0 : index
    %c3_158 = arith.constant 3 : index
    %c4_159 = arith.constant 4 : index
    %c4_160 = arith.constant 4 : index
    %223 = vector.load %arg5[%c0_157, %c3_158, %c4_159, %c4_160] : memref<2x4x20x20xf32, #tpu.memory_space<vmem>>, vector<2x1x16x16xf32>
    %224 = vector.shape_cast %223 : vector<2x1x16x16xf32> to vector<2x16x16xf32>
    %c35 = arith.constant 35 : index
    %225 = memref.load %arg1[%c35] : memref<36xf32, #tpu.memory_space<smem>>
    %226 = vector.broadcast %225 : f32 to vector<2x16x16xf32>
    %227 = arith.mulf %224, %226 : vector<2x16x16xf32>
    %228 = arith.addf %222, %227 : vector<2x16x16xf32>
    %229 = vector.shape_cast %228 : vector<2x16x16xf32> to vector<2x256xf32>
    %cst_161 = arith.constant 0.000000e+00 : f32
    %230 = vector.broadcast %cst_161 : f32 to vector<2x256xf32>
    %c0_162 = arith.constant 0 : index
    %231 = memref.load %arg2[%c0_162] : memref<16xf32, #tpu.memory_space<smem>>
    %232 = vector.broadcast %231 : f32 to vector<2x256xf32>
    %233 = arith.mulf %61, %232 : vector<2x256xf32>
    %234 = arith.addf %230, %233 : vector<2x256xf32>
    %c1_163 = arith.constant 1 : index
    %235 = memref.load %arg2[%c1_163] : memref<16xf32, #tpu.memory_space<smem>>
    %236 = vector.broadcast %235 : f32 to vector<2x256xf32>
    %237 = arith.mulf %117, %236 : vector<2x256xf32>
    %238 = arith.addf %234, %237 : vector<2x256xf32>
    %c2_164 = arith.constant 2 : index
    %239 = memref.load %arg2[%c2_164] : memref<16xf32, #tpu.memory_space<smem>>
    %240 = vector.broadcast %239 : f32 to vector<2x256xf32>
    %241 = arith.mulf %173, %240 : vector<2x256xf32>
    %242 = arith.addf %238, %241 : vector<2x256xf32>
    %c3_165 = arith.constant 3 : index
    %243 = memref.load %arg2[%c3_165] : memref<16xf32, #tpu.memory_space<smem>>
    %244 = vector.broadcast %243 : f32 to vector<2x256xf32>
    %245 = arith.mulf %229, %244 : vector<2x256xf32>
    %246 = arith.addf %242, %245 : vector<2x256xf32>
    %c0_166 = arith.constant 0 : index
    %247 = memref.load %arg3[%c0_166] : memref<4xf32, #tpu.memory_space<smem>>
    %248 = vector.broadcast %247 : f32 to vector<2x256xf32>
    %249 = arith.addf %246, %248 : vector<2x256xf32>
    %c0_167 = arith.constant 0 : index
    %c0_168 = arith.constant 0 : index
    %c0_169 = arith.constant 0 : index
    %250 = vector.load %arg4[%c0_167, %c0_168, %c0_169] : memref<2x4x256xf32, #tpu.memory_space<vmem>>, vector<2x1x256xf32>
    %251 = vector.shape_cast %250 : vector<2x1x256xf32> to vector<2x256xf32>
    %252 = vector.shape_cast %249 : vector<2x256xf32> to vector<2x1x256xf32>
    tpu.vector_store %arg4[%c0_167, %c0_168, %c0_169], %252 {strides = array<i32>} : memref<2x4x256xf32, #tpu.memory_space<vmem>>, vector<2x1x256xf32>,
    %cst_170 = arith.constant 0.000000e+00 : f32
    %253 = vector.broadcast %cst_170 : f32 to vector<2x256xf32>
    %c4_171 = arith.constant 4 : index
    %254 = memref.load %arg2[%c4_171] : memref<16xf32, #tpu.memory_space<smem>>
    %255 = vector.broadcast %254 : f32 to vector<2x256xf32>
    %256 = arith.mulf %61, %255 : vector<2x256xf32>
    %257 = arith.addf %253, %256 : vector<2x256xf32>
    %c5_172 = arith.constant 5 : index
    %258 = memref.load %arg2[%c5_172] : memref<16xf32, #tpu.memory_space<smem>>
    %259 = vector.broadcast %258 : f32 to vector<2x256xf32>
    %260 = arith.mulf %117, %259 : vector<2x256xf32>
    %261 = arith.addf %257, %260 : vector<2x256xf32>
    %c6_173 = arith.constant 6 : index
    %262 = memref.load %arg2[%c6_173] : memref<16xf32, #tpu.memory_space<smem>>
    %263 = vector.broadcast %262 : f32 to vector<2x256xf32>
    %264 = arith.mulf %173, %263 : vector<2x256xf32>
    %265 = arith.addf %261, %264 : vector<2x256xf32>
    %c7_174 = arith.constant 7 : index
    %266 = memref.load %arg2[%c7_174] : memref<16xf32, #tpu.memory_space<smem>>
    %267 = vector.broadcast %266 : f32 to vector<2x256xf32>
    %268 = arith.mulf %229, %267 : vector<2x256xf32>
    %269 = arith.addf %265, %268 : vector<2x256xf32>
    %c1_175 = arith.constant 1 : index
    %270 = memref.load %arg3[%c1_175] : memref<4xf32, #tpu.memory_space<smem>>
    %271 = vector.broadcast %270 : f32 to vector<2x256xf32>
    %272 = arith.addf %269, %271 : vector<2x256xf32>
    %c0_176 = arith.constant 0 : index
    %c1_177 = arith.constant 1 : index
    %c0_178 = arith.constant 0 : index
    %273 = vector.load %arg4[%c0_176, %c1_177, %c0_178] : memref<2x4x256xf32, #tpu.memory_space<vmem>>, vector<2x1x256xf32>
    %274 = vector.shape_cast %273 : vector<2x1x256xf32> to vector<2x256xf32>
    %275 = vector.shape_cast %272 : vector<2x256xf32> to vector<2x1x256xf32>
    tpu.vector_store %arg4[%c0_176, %c1_177, %c0_178], %275 {strides = array<i32>} : memref<2x4x256xf32, #tpu.memory_space<vmem>>, vector<2x1x256xf32>,
    %cst_179 = arith.constant 0.000000e+00 : f32
    %276 = vector.broadcast %cst_179 : f32 to vector<2x256xf32>
    %c8_180 = arith.constant 8 : index
    %277 = memref.load %arg2[%c8_180] : memref<16xf32, #tpu.memory_space<smem>>
    %278 = vector.broadcast %277 : f32 to vector<2x256xf32>
    %279 = arith.mulf %61, %278 : vector<2x256xf32>
    %280 = arith.addf %276, %279 : vector<2x256xf32>
    %c9_181 = arith.constant 9 : index
    %281 = memref.load %arg2[%c9_181] : memref<16xf32, #tpu.memory_space<smem>>
    %282 = vector.broadcast %281 : f32 to vector<2x256xf32>
    %283 = arith.mulf %117, %282 : vector<2x256xf32>
    %284 = arith.addf %280, %283 : vector<2x256xf32>
    %c10_182 = arith.constant 10 : index
    %285 = memref.load %arg2[%c10_182] : memref<16xf32, #tpu.memory_space<smem>>
    %286 = vector.broadcast %285 : f32 to vector<2x256xf32>
    %287 = arith.mulf %173, %286 : vector<2x256xf32>
    %288 = arith.addf %284, %287 : vector<2x256xf32>
    %c11_183 = arith.constant 11 : index
    %289 = memref.load %arg2[%c11_183] : memref<16xf32, #tpu.memory_space<smem>>
    %290 = vector.broadcast %289 : f32 to vector<2x256xf32>
    %291 = arith.mulf %229, %290 : vector<2x256xf32>
    %292 = arith.addf %288, %291 : vector<2x256xf32>
    %c2_184 = arith.constant 2 : index
    %293 = memref.load %arg3[%c2_184] : memref<4xf32, #tpu.memory_space<smem>>
    %294 = vector.broadcast %293 : f32 to vector<2x256xf32>
    %295 = arith.addf %292, %294 : vector<2x256xf32>
    %c0_185 = arith.constant 0 : index
    %c2_186 = arith.constant 2 : index
    %c0_187 = arith.constant 0 : index
    %296 = vector.load %arg4[%c0_185, %c2_186, %c0_187] : memref<2x4x256xf32, #tpu.memory_space<vmem>>, vector<2x1x256xf32>
    %297 = vector.shape_cast %296 : vector<2x1x256xf32> to vector<2x256xf32>
    %298 = vector.shape_cast %295 : vector<2x256xf32> to vector<2x1x256xf32>
    tpu.vector_store %arg4[%c0_185, %c2_186, %c0_187], %298 {strides = array<i32>} : memref<2x4x256xf32, #tpu.memory_space<vmem>>, vector<2x1x256xf32>,
    %cst_188 = arith.constant 0.000000e+00 : f32
    %299 = vector.broadcast %cst_188 : f32 to vector<2x256xf32>
    %c12_189 = arith.constant 12 : index
    %300 = memref.load %arg2[%c12_189] : memref<16xf32, #tpu.memory_space<smem>>
    %301 = vector.broadcast %300 : f32 to vector<2x256xf32>
    %302 = arith.mulf %61, %301 : vector<2x256xf32>
    %303 = arith.addf %299, %302 : vector<2x256xf32>
    %c13_190 = arith.constant 13 : index
    %304 = memref.load %arg2[%c13_190] : memref<16xf32, #tpu.memory_space<smem>>
    %305 = vector.broadcast %304 : f32 to vector<2x256xf32>
    %306 = arith.mulf %117, %305 : vector<2x256xf32>
    %307 = arith.addf %303, %306 : vector<2x256xf32>
    %c14_191 = arith.constant 14 : index
    %308 = memref.load %arg2[%c14_191] : memref<16xf32, #tpu.memory_space<smem>>
    %309 = vector.broadcast %308 : f32 to vector<2x256xf32>
    %310 = arith.mulf %173, %309 : vector<2x256xf32>
    %311 = arith.addf %307, %310 : vector<2x256xf32>
    %c15_192 = arith.constant 15 : index
    %312 = memref.load %arg2[%c15_192] : memref<16xf32, #tpu.memory_space<smem>>
    %313 = vector.broadcast %312 : f32 to vector<2x256xf32>
    %314 = arith.mulf %229, %313 : vector<2x256xf32>
    %315 = arith.addf %311, %314 : vector<2x256xf32>
    %c3_193 = arith.constant 3 : index
    %316 = memref.load %arg3[%c3_193] : memref<4xf32, #tpu.memory_space<smem>>
    %317 = vector.broadcast %316 : f32 to vector<2x256xf32>
    %318 = arith.addf %315, %317 : vector<2x256xf32>
    %c0_194 = arith.constant 0 : index
    %c3_195 = arith.constant 3 : index
    %c0_196 = arith.constant 0 : index
    %319 = vector.load %arg4[%c0_194, %c3_195, %c0_196] : memref<2x4x256xf32, #tpu.memory_space<vmem>>, vector<2x1x256xf32>
    %320 = vector.shape_cast %319 : vector<2x1x256xf32> to vector<2x256xf32>
    %321 = vector.shape_cast %318 : vector<2x256xf32> to vector<2x1x256xf32>
    tpu.vector_store %arg4[%c0_194, %c3_195, %c0_196], %321 {strides = array<i32>} : memref<2x4x256xf32, #tpu.memory_space<vmem>>, vector<2x1x256xf32>,
    return
  }
}

</mosaic_0001>

<bundles_post_ra>
// kernel: tpu_custom_call.1
= control target key start
LH: loop header
LB: loop body
LE: loop exit
PB: predicated region body
PF: predicated region fallthrough
CT: control target
= control target key end

     0   :  { %9 = vsyncpa [#allocation4], 0  ;;  %s3320_s0 = inlined_call_operand.hbm [shape: f32[2,4,16,16], index: 0, kind: input, shape index: {}]   ;;  %s3321_s1 = inlined_call_operand.vmem [shape: f32[36], index: 1, kind: input, shape index: {}]   ;;  %s3322_s2 = inlined_call_operand.vmem [shape: f32[16], index: 2, kind: input, shape index: {}]   ;;  %s3323_s3 = inlined_call_operand.vmem [shape: f32[4], index: 3, kind: input, shape index: {}]   ;;  %s3324_s4 = inlined_call_operand.hbm [shape: f32[2,4,256], index: 4, kind: output, shape index: {}]  }
   0x1   :  { %10 = vsyncpa [#allocation6], 0 }
   0x2   :  { %11 = vsyncpa [#allocation9], 0  ;;  %s41_s17 = sshll.u32 %s3322_s2, 4  ;;  %s42_s17 = int_to_ptr.vmem [resolvable:$true] %s41_s17 }
   0x3   :  { %12 = vsyncpa [#allocation5], 0  ;;  %s2149_s18 = scalar_lea.vmem %s42_s17, 16  ;;  %p2154_p1 = scmp.lt.s32.totalorder %s42_s17, %s42_s17 }
   0x4   :  { %p2150_p0 = scmp.ne.s32.totalorder %s42_s17, %s2149_s18  ;;  %p2155_p2 = scmp.lt.s32.totalorder %s2149_s18, %s2149_s18 }
   0x6   :  { %p2156_p3 = por %p2155_p2, %p2154_p1 }
   0x8   :  { %p2157_p4 = pnand %p2156_p3, %p2150_p0 }
   0xa   :  { %2160 = shalt.err (!%p2157_p4)
}
   0xb   :  { %s2233_s19 = smov [#allocation8]   ;;  %s2234_s20 = smov [#allocation3]  }
   0xc   :  { %44 = dma.vmem_to_smem %s42_s17, 16, %s2233_s19, [#allocation9]  }
   0xd   :  { %s18_s21 = sshll.u32 %s2234_s20, 4  ;;  %s19_s21 = int_to_ptr.vmem [resolvable:$true] %s18_s21 }
   0xe   :  { %s2169_s22 = scalar_lea.vmem %s19_s21, 2048  ;;  %p2174_p6 = scmp.lt.s32.totalorder %s19_s21, %s19_s21 }
   0xf   :  { %p2170_p5 = scmp.ne.s32.totalorder %s19_s21, %s2169_s22  ;;  %p2175_p7 = scmp.lt.s32.totalorder %s2169_s22, %s2169_s22 }
  0x11   :  { %p2176_p8 = por %p2175_p7, %p2174_p6 }
  0x13   :  { %p2177_p9 = pnand %p2176_p8, %p2170_p5 }
  0x15   :  { %2180 = shalt.err (!%p2177_p9)
}
  0x16   :  { %s2235_s2 = smov 128   ;;  %s2236_s23 = smov 8  }
  0x17   :  { %24 = dma.hbm_to_vmem [thread:$0]  %s3320_s0, 2048, %s19_s21, [#allocation4], %s2235_s2, %s2235_s2, %s2236_s23  }
  0x18   :  { %s31_s28 = sshll.u32 %s3321_s1, 4  ;;  %s51_s5 = sshll.u32 %s3323_s3, 4  ;;  %s32_s28 = int_to_ptr.vmem [resolvable:$true] %s31_s28  ;;  %s52_s5 = int_to_ptr.vmem [resolvable:$true] %s51_s5 }
  0x19   :  { %s2181_s6 = scalar_lea.vmem %s32_s28, 16  ;;  %p2186_p11 = scmp.lt.s32.totalorder %s32_s28, %s32_s28 }
  0x1a   :  { %p2182_p10 = scmp.ne.s32.totalorder %s32_s28, %s2181_s6  ;;  %p2187_p12 = scmp.lt.s32.totalorder %s2181_s6, %s2181_s6 }
  0x1c   :  { %p2188_p13 = por %p2187_p12, %p2186_p11 }
  0x1e   :  { %p2189_p0 = pnand %p2188_p13, %p2182_p10 }
  0x20   :  { %2192 = shalt.err (!%p2189_p0)
}
  0x21   :  { %s2237_s7 = smov [#allocation7]   ;;  %s2193_s0 = scalar_lea.vmem %s52_s5, 16 }
  0x22   :  { %34 = dma.vmem_to_smem %s32_s28, 16, %s2237_s7, [#allocation6]  }
  0x23   :  { %p2194_p1 = scmp.ne.s32.totalorder %s52_s5, %s2193_s0  ;;  %p2198_p2 = scmp.lt.s32.totalorder %s52_s5, %s52_s5 }
  0x24   :  { %p2199_p3 = scmp.lt.s32.totalorder %s2193_s0, %s2193_s0 }
  0x26   :  { %p2200_p4 = por %p2199_p3, %p2198_p2 }
  0x28   :  { %p2201_p5 = pnand %p2200_p4, %p2194_p1 }
  0x2a   :  { %2204 = shalt.err (!%p2201_p5)
}
  0x2b   :  { %s2238_s1 = smov [#allocation10]  }
  0x2c   :  { %54 = dma.vmem_to_smem %s52_s5, 16, %s2238_s1, [#allocation9]  }
  0x2d   :  { %2225 = dma.done.wait [#allocation4], 2048  }
  0x2e   :  { %2226 = vsyncadd [#allocation4], 4294965248 }
  0x2f   :  { %2227 = dma.done.wait [#allocation6], 16  }
  0x30   :  { %2228 = vsyncadd [#allocation6], 4294967280 }
  0x31   :  { %2229 = dma.done.wait [#allocation9], 32  }
  0x32   :  { %2230 = vsyncadd [#allocation9], 4294967264 }
  0x33   :  { %67 = sfence }
  0x34   :  { %v96_v0 = vld [vmem:[#allocation3 + $0x10] sm:$0xff]  ;;  %v94_v1 = vld [vmem:[#allocation3] sm:$0xff]  ;;  %v97_v2 = vld [vmem:[#allocation3 + $0x18] sm:$0xff]  ;;  %vm68_vm0 = vcmask 162816   ;;  %s2239_s3 = smov 2   ;;  %v3326_v10 = vmov 0.0  }
  0x35   :  { %v112_v3 = vmax.f32 %v96_v0, 0.0  ;;  %v110_v4 = vmax.f32 %v94_v1, 0.0  ;;  %v95_v5 = vld [vmem:[#allocation3 + $0x8] sm:$0xff]  ;;  %v113_v6 = vmax.f32 %v97_v2, 0.0  ;;  %v98_v9 = vld [vmem:[#allocation3 + $0x20] sm:$0xff]  ;;  %73 = vst.msk [vmem:[#allocation2 + $0x18] sm:$0xff] %vm68_vm0, %v3326_v10 }
  0x36   :  { %v111_v7 = vmax.f32 %v95_v5, 0.0  ;;  %v99_v8 = vld [vmem:[#allocation3 + $0x28] sm:$0xff]  ;;  %74 = vst.msk [vmem:[#allocation2 + $0x20] sm:$0xff] %vm68_vm0, %v3326_v10  ;;  %69 = vst.msk [vmem:[#allocation2] sm:$0xff] %vm68_vm0, %v3326_v10  ;;  %vm71_vm1 = vcmask 158720   ;;  %v114_v12 = vmax.f32 %v98_v9, 0.0 }
  0x37   :  { %146 = vrot.lane.b32.xlu1 %v112_v3, %s2239_s3  ;;  %142 = vrot.lane.b32.xlu0 %v110_v4, %s2239_s3  ;;  %70 = vst.msk [vmem:[#allocation2 + $0x8] sm:$0xff] %vm68_vm0, %v3326_v10  ;;  %76 = vst.msk [vmem:[#allocation2 + $0x30] sm:$0xff] %vm68_vm0, %v3326_v10  ;;  %v115_v11 = vmax.f32 %v99_v8, 0.0  ;;  %v101_v13 = vld [vmem:[#allocation3 + $0x38] sm:$0xff]  ;;  %v100_v14 = vld [vmem:[#allocation3 + $0x30] sm:$0xff]  ;;  %vm190_vm2 = vcmask 146448  }
  0x38   :  { %77 = vst.msk [vmem:[#allocation2 + $0x38] sm:$0xff] %vm68_vm0, %v3326_v10  ;;  %79 = vst.msk [vmem:[#allocation2 + $0x48] sm:$0xff] %vm68_vm0, %v3326_v10  ;;  %v117_v15 = vmax.f32 %v101_v13, 0.0  ;;  %v116_v16 = vmax.f32 %v100_v14, 0.0  ;;  %v103_v17 = vld [vmem:[#allocation3 + $0x48] sm:$0xff]  ;;  %v102_v18 = vld [vmem:[#allocation3 + $0x40] sm:$0xff] }
  0x39   :  { %80 = vst.msk [vmem:[#allocation2 + $0x50] sm:$0xff] %vm68_vm0, %v3326_v10  ;;  %82 = vst.msk [vmem:[#allocation2 + $0x60] sm:$0xff] %vm68_vm0, %v3326_v10  ;;  %v119_v19 = vmax.f32 %v103_v17, 0.0  ;;  %v118_v20 = vmax.f32 %v102_v18, 0.0  ;;  %v105_v21 = vld [vmem:[#allocation3 + $0x58] sm:$0xff]  ;;  %v104_v22 = vld [vmem:[#allocation3 + $0x50] sm:$0xff] }
  0x3a   :  { %83 = vst.msk [vmem:[#allocation2 + $0x68] sm:$0xff] %vm68_vm0, %v3326_v10  ;;  %85 = vst.msk [vmem:[#allocation2 + $0x78] sm:$0xff] %vm68_vm0, %v3326_v10  ;;  %v121_v23 = vmax.f32 %v105_v21, 0.0  ;;  %v120_v24 = vmax.f32 %v104_v22, 0.0  ;;  %v107_v25 = vld [vmem:[#allocation3 + $0x68] sm:$0xff]  ;;  %v106_v26 = vld [vmem:[#allocation3 + $0x60] sm:$0xff] }
  0x3b   :  { %86 = vst.msk [vmem:[#allocation2 + $0x80] sm:$0xff] %vm68_vm0, %v3326_v10  ;;  %88 = vst.msk [vmem:[#allocation2 + $0x90] sm:$0xff] %vm68_vm0, %v3326_v10  ;;  %148 = vrot.lane.b32.xlu1 %v113_v6, %s2239_s3  ;;  %144 = vrot.lane.b32.xlu0 %v111_v7, %s2239_s3  ;;  %v123_v27 = vmax.f32 %v107_v25, 0.0  ;;  %v122_v28 = vmax.f32 %v106_v26, 0.0  ;;  %v108_v29 = vld [vmem:[#allocation3 + $0x70] sm:$0xff]  ;;  %v109_v30 = vld [vmem:[#allocation3 + $0x78] sm:$0xff] }
  0x3c   :  { %89 = vst.msk [vmem:[#allocation2 + $0x98] sm:$0xff] %vm68_vm0, %v3326_v10  ;;  %91 = vst.msk [vmem:[#allocation2 + $0xa8] sm:$0xff] %vm68_vm0, %v3326_v10  ;;  %v124_v31 = vmax.f32 %v108_v29, 0.0  ;;  %v125_v32 = vmax.f32 %v109_v30, 0.0  ;;  %s2075_s8 = sld [smem:[#allocation7 + $0x1]]  ;;  %s2241_s9 = smov 126  }
  0x3d   :  { %92 = vst.msk [vmem:[#allocation2 + $0xb0] sm:$0xff] %vm68_vm0, %v3326_v10  ;;  %s2076_s10 = sld [smem:[#allocation7 + $0x2]]  ;;  %s2242_s12 = smov 124   ;;  %vm593_vm3 = vcmask 130048   ;;  %vm595_vm4 = vcmask 261120   ;;  %vm597_vm5 = vcmask 392192  }
  0x3e   :  { %75 = vst.msk [vmem:[#allocation2 + $0x28] sm:$0xf] %vm71_vm1, %v3326_v10  ;;  %72 = vst.msk [vmem:[#allocation2 + $0x10] sm:$0xf] %vm71_vm1, %v3326_v10  ;;  %s2078_s11 = sld [smem:[#allocation7 + $0x4]]  ;;  %vm599_vm6 = vcmask 523264  }
  0x3f   :  { %78 = vst.msk [vmem:[#allocation2 + $0x40] sm:$0xf] %vm71_vm1, %v3326_v10  ;;  %81 = vst.msk [vmem:[#allocation2 + $0x58] sm:$0xf] %vm71_vm1, %v3326_v10  ;;  %152 = vrot.lane.b32.xlu1 %v115_v11, %s2239_s3  ;;  %150 = vrot.lane.b32.xlu0 %v114_v12, %s2239_s3  ;;  %s2079_s13 = sld [smem:[#allocation7 + $0x5]]  ;;  %vm601_vm7 = vcmask 654336  }
  0x40   :  { %84 = vst.msk [vmem:[#allocation2 + $0x70] sm:$0xf] %vm71_vm1, %v3326_v10  ;;  %87 = vst.msk [vmem:[#allocation2 + $0x88] sm:$0xf] %vm71_vm1, %v3326_v10  ;;  %s2081_s14 = sld [smem:[#allocation7 + $0x7]]  ;;  %vm603_vm8 = vcmask 785408  }
  0x41   :  { %90 = vst.msk [vmem:[#allocation2 + $0xa0] sm:$0xf] %vm71_vm1, %v3326_v10  ;;  %93 = vst.msk [vmem:[#allocation2 + $0xb8] sm:$0xf] %vm71_vm1, %v3326_v10  ;;  %s2082_s15 = sld [smem:[#allocation7 + $0x8]]  ;;  %vm605_vm9 = vcmask 916480  }
  0x42   :  { %v222_v37 = vstv %s2075_s8  ;;  %s2084_s16 = sld [smem:[#allocation7 + $0xa]] }
  0x43   :  { %156 = vrot.lane.b32.xlu1 %v117_v15, %s2239_s3  ;;  %154 = vrot.lane.b32.xlu0 %v116_v16, %s2239_s3  ;;  %v248_v56 = vstv %s2076_s10  ;;  %s2085_s17 = sld [smem:[#allocation7 + $0xb]] }
  0x44   :  { %v288_v0 = vstv %s2078_s11  ;;  %s2087_s18 = sld [smem:[#allocation7 + $0xd]] }
  0x45   :  { %v314_v8 = vstv %s2079_s13  ;;  %s2088_s19 = sld [smem:[#allocation7 + $0xe]] }
  0x46   :  { %v354_v15 = vstv %s2081_s14  ;;  %s2090_s20 = sld [smem:[#allocation7 + $0x10]] }
  0x47   :  { %160 = vrot.lane.b32.xlu1 %v119_v19, %s2239_s3  ;;  %158 = vrot.lane.b32.xlu0 %v118_v20, %s2239_s3  ;;  %s2091_s21 = sld [smem:[#allocation7 + $0x11]] }
  0x48   :  { %v630_v29 = vstv %s2084_s16  ;;  %s2093_s22 = sld [smem:[#allocation7 + $0x13]]  ;;  %s2247_s16 = smov 64  }
  0x49   :  { %s2094_s24 = sld [smem:[#allocation7 + $0x14]] }
  0x4a   :  { %s2102_s25 = sld [smem:[#allocation7 + $0x1c]] }
  0x4b   :  { %164 = vrot.lane.b32.xlu1 %v121_v23, %s2239_s3  ;;  %162 = vrot.lane.b32.xlu0 %v120_v24, %s2239_s3  ;;  %v380_v23 = vstv %s2082_s15  ;;  %s2103_s26 = sld [smem:[#allocation7 + $0x1d]]  ;;  %s2246_s15 = smov 16  }
  0x4c   :  { %s211_s27 = sld [smem:[#allocation7]] }
  0x4d   :  { %s2077_s28 = sld [smem:[#allocation7 + $0x3]] }
  0x4e   :  { %s2096_s29 = sld [smem:[#allocation7 + $0x16]] }
  0x4f   :  { %168 = vrot.lane.b32.xlu1 %v123_v27, %s2239_s3  ;;  %166 = vrot.lane.b32.xlu0 %v122_v28, %s2239_s3  ;;  %s2097_s30 = sld [smem:[#allocation7 + $0x17]] }
  0x50   :  { %s2080_s5 = sld [smem:[#allocation7 + $0x6]] }
  0x51   :  { %s2105_s6 = sld [smem:[#allocation7 + $0x1f]] }
  0x52   :  { %s2106_s7 = sld [smem:[#allocation7 + $0x20]] }
  0x53   :  { %170 = vrot.lane.b32.xlu0 %v124_v31, %s2239_s3  ;;  %172 = vrot.lane.b32.xlu1 %v125_v32, %s2239_s3  ;;  %s2099_s0 = sld [smem:[#allocation7 + $0x19]] }
  0x54   :  { %s2617_s1 = sld [smem:[#allocation7 + $0x1a]] }
  0x55   :  { %s2630_s3 = sld [smem:[#allocation7 + $0x9]] }
  0x56   :  { %s2640_s8 = sld [smem:[#allocation7 + $0xc]] }
  0x57   :  { %s2657_s10 = sld [smem:[#allocation7 + $0x22]] }
  0x58   :  { %s2109_s11 = sld [smem:[#allocation7 + $0x23]] }
  0x59   :  { %s2089_s13 = sld [smem:[#allocation7 + $0xf]] }
  0x5a   :  { %s2764_s14 = sld [smem:[#allocation7 + $0x15]] }
  0xa9   :  { %v147_v33 = vpop.permute.xlu1 %146  ;;  %v143_v34 = vpop.permute.xlu0 %142 }
  0xaa   :  { %193 = vst.msk [vmem:[#allocation2 + $0x1a] sm:$0xff] %vm190_vm2, %v147_v33  ;;  %191 = vst.msk [vmem:[#allocation2 + $0x2] sm:$0xff] %vm190_vm2, %v143_v34 }
  0xad   :  { %v149_v35 = vpop.permute.xlu1 %148  ;;  %v145_v36 = vpop.permute.xlu0 %144 }
  0xae   :  { %194 = vst.msk [vmem:[#allocation2 + $0x22] sm:$0xff] %vm190_vm2, %v149_v35  ;;  %192 = vst.msk [vmem:[#allocation2 + $0xa] sm:$0xff] %vm190_vm2, %v145_v36 }
  0xb1   :  { %v153_v38 = vpop.permute.xlu1 %152  ;;  %v151_v39 = vpop.permute.xlu0 %150  ;;  %v2354_v40 = vld [vmem:[#allocation2] sm:$0xff]  ;;  %v2438_v30 = vld [vmem:[#allocation2 + $0x18] sm:$0xff] }
  0xb2   :  { %196 = vst.msk [vmem:[#allocation2 + $0x3a] sm:$0xff] %vm190_vm2, %v153_v38  ;;  %195 = vst.msk [vmem:[#allocation2 + $0x32] sm:$0xff] %vm190_vm2, %v151_v39  ;;  %v223_v41 = vmul.f32 %v222_v37, %v2354_v40  ;;  %v249_v60 = vmul.f32 %v248_v56, %v2354_v40  ;;  %v2390_v1 = vld [vmem:[#allocation2 + $0x2] sm:$0xff]  ;;  %v631_v34 = vmul.f32 %v630_v29, %v2438_v30 }
  0xb3   :  { %v289_v3 = vmul.f32 %v288_v0, %v2390_v1  ;;  %v315_v11 = vmul.f32 %v314_v8, %v2390_v1 }
  0xb4   :  { %231 = vrot.lane.b32.xlu0 %v223_v41, %s2241_s9 }
  0xb5   :  { %v157_v42 = vpop.permute.xlu1 %156  ;;  %v155_v43 = vpop.permute.xlu0 %154  ;;  %v2360_v44 = vld [vmem:[#allocation2 + $0x8] sm:$0xff]  ;;  %v2436_v28 = vld [vmem:[#allocation2 + $0x20] sm:$0xff] }
  0xb6   :  { %198 = vst.msk [vmem:[#allocation2 + $0x52] sm:$0xff] %vm190_vm2, %v157_v42  ;;  %197 = vst.msk [vmem:[#allocation2 + $0x4a] sm:$0xff] %vm190_vm2, %v155_v43  ;;  %v224_v45 = vmul.f32 %v222_v37, %v2360_v44  ;;  %v250_v59 = vmul.f32 %v248_v56, %v2360_v44  ;;  %v2388_v63 = vld [vmem:[#allocation2 + $0xa] sm:$0xff]  ;;  %v632_v33 = vmul.f32 %v630_v29, %v2436_v28  ;;  %v2460_v43 = vld [vmem:[#allocation2 + $0x22] sm:$0xff] }
  0xb7   :  { %v290_v2 = vmul.f32 %v288_v0, %v2388_v63  ;;  %v316_v9 = vmul.f32 %v314_v8, %v2388_v63  ;;  %v2412_v14 = vld [vmem:[#allocation2 + $0xc] sm:$0xff]  ;;  %v2414_v16 = vld [vmem:[#allocation2 + $0x4] sm:$0xff] }
  0xb8   :  { %233 = vrot.lane.b32.xlu1 %v224_v45, %s2241_s9  ;;  %v356_v17 = vmul.f32 %v354_v15, %v2412_v14  ;;  %v355_v18 = vmul.f32 %v354_v15, %v2414_v16  ;;  %v382_v24 = vmul.f32 %v380_v23, %v2412_v14  ;;  %v381_v25 = vmul.f32 %v380_v23, %v2414_v16 }
  0xb9   :  { %v161_v46 = vpop.permute.xlu1 %160  ;;  %v159_v47 = vpop.permute.xlu0 %158  ;;  %v696_v45 = vstv %s2087_s18  ;;  %s2248_s18 = smov 48  }
  0xba   :  { %200 = vst.msk [vmem:[#allocation2 + $0x6a] sm:$0xff] %vm190_vm2, %v161_v46  ;;  %199 = vst.msk [vmem:[#allocation2 + $0x62] sm:$0xff] %vm190_vm2, %v159_v47  ;;  %v2462_v46 = vld [vmem:[#allocation2 + $0x1a] sm:$0xff]  ;;  %v698_v47 = vmul.f32 %v696_v45, %v2460_v43 }
  0xbd   :  { %v165_v48 = vpop.permute.xlu1 %164  ;;  %v163_v49 = vpop.permute.xlu0 %162 }
  0xbe   :  { %202 = vst.msk [vmem:[#allocation2 + $0x82] sm:$0xff] %vm190_vm2, %v165_v48  ;;  %201 = vst.msk [vmem:[#allocation2 + $0x7a] sm:$0xff] %vm190_vm2, %v163_v49  ;;  %v697_v48 = vmul.f32 %v696_v45, %v2462_v46 }
  0xc1   :  { %v2370_v50 = vld [vmem:[#allocation2 + $0x68] sm:$0xff]  ;;  %v2372_v51 = vld [vmem:[#allocation2 + $0x60] sm:$0xff]  ;;  %v169_v52 = vpop.permute.xlu1 %168  ;;  %v167_v53 = vpop.permute.xlu0 %166 }
  0xc2   :  { %v226_v54 = vmul.f32 %v222_v37, %v2370_v50  ;;  %v225_v55 = vmul.f32 %v222_v37, %v2372_v51  ;;  %204 = vst.msk [vmem:[#allocation2 + $0x9a] sm:$0xff] %vm190_vm2, %v169_v52  ;;  %203 = vst.msk [vmem:[#allocation2 + $0x92] sm:$0xff] %vm190_vm2, %v167_v53  ;;  %v252_v61 = vmul.f32 %v248_v56, %v2370_v50  ;;  %v2396_v4 = vld [vmem:[#allocation2 + $0x6a] sm:$0xff]  ;;  %v2398_v5 = vld [vmem:[#allocation2 + $0x62] sm:$0xff]  ;;  %v656_v37 = vstv %s2085_s17  ;;  %s2101_s17 = sld [smem:[#allocation7 + $0x1b]] }
  0xc3   :  { %v251_v62 = vmul.f32 %v248_v56, %v2372_v51  ;;  %v292_v6 = vmul.f32 %v288_v0, %v2396_v4  ;;  %v291_v7 = vmul.f32 %v288_v0, %v2398_v5  ;;  %v318_v12 = vmul.f32 %v314_v8, %v2396_v4  ;;  %v2420_v19 = vld [vmem:[#allocation2 + $0x6c] sm:$0xff]  ;;  %v2422_v20 = vld [vmem:[#allocation2 + $0x64] sm:$0xff] }
  0xc4   :  { %237 = vrot.lane.b32.xlu1 %v226_v54, %s2241_s9  ;;  %235 = vrot.lane.b32.xlu0 %v225_v55, %s2241_s9  ;;  %v317_v13 = vmul.f32 %v314_v8, %v2398_v5  ;;  %v358_v21 = vmul.f32 %v354_v15, %v2420_v19  ;;  %v357_v22 = vmul.f32 %v354_v15, %v2422_v20  ;;  %v722_v55 = vstv %s2088_s19  ;;  %s2249_s19 = smov 96  }
  0xc5   :  { %v171_v57 = vpop.permute.xlu0 %170  ;;  %v173_v58 = vpop.permute.xlu1 %172  ;;  %v384_v26 = vmul.f32 %v380_v23, %v2420_v19  ;;  %v383_v27 = vmul.f32 %v380_v23, %v2422_v20  ;;  %v2442_v31 = vld [vmem:[#allocation2 + $0x80] sm:$0xff]  ;;  %v2444_v32 = vld [vmem:[#allocation2 + $0x78] sm:$0xff]  ;;  %v658_v38 = vmul.f32 %v656_v37, %v2436_v28  ;;  %v657_v39 = vmul.f32 %v656_v37, %v2438_v30 }
  0xc6   :  { %205 = vst.msk [vmem:[#allocation2 + $0xaa] sm:$0xff] %vm190_vm2, %v171_v57  ;;  %206 = vst.msk [vmem:[#allocation2 + $0xb2] sm:$0xff] %vm190_vm2, %v173_v58  ;;  %v634_v35 = vmul.f32 %v630_v29, %v2442_v31  ;;  %v633_v36 = vmul.f32 %v630_v29, %v2444_v32  ;;  %v660_v41 = vmul.f32 %v656_v37, %v2442_v31  ;;  %v2468_v49 = vld [vmem:[#allocation2 + $0x82] sm:$0xff]  ;;  %v2470_v52 = vld [vmem:[#allocation2 + $0x7a] sm:$0xff]  ;;  %v1057_v29 = vstv %s2094_s24  ;;  %s2251_s24 = smov 112  }
  0xc7   :  { %v659_v42 = vmul.f32 %v656_v37, %v2444_v32  ;;  %v700_v53 = vmul.f32 %v696_v45, %v2468_v49  ;;  %v699_v54 = vmul.f32 %v696_v45, %v2470_v52  ;;  %v724_v56 = vmul.f32 %v722_v55, %v2460_v43  ;;  %v2532_v37 = vld [vmem:[#allocation2 + $0x50] sm:$0xff] }
  0xc8   :  { %259 = vrot.lane.b32.xlu1 %v250_v59, %s2242_s12  ;;  %257 = vrot.lane.b32.xlu0 %v249_v60, %s2242_s12  ;;  %v723_v57 = vmul.f32 %v722_v55, %v2462_v46  ;;  %v726_v58 = vmul.f32 %v722_v55, %v2468_v49  ;;  %v725_v59 = vmul.f32 %v722_v55, %v2470_v52  ;;  %v2484_v60 = vld [vmem:[#allocation2 + $0x24] sm:$0xff] }
  0xc9   :  { %v2516_v23 = vld [vmem:[#allocation2 + $0x90] sm:$0xff] }
  0xcc   :  { %263 = vrot.lane.b32.xlu1 %v252_v61, %s2242_s12  ;;  %261 = vrot.lane.b32.xlu0 %v251_v62, %s2242_s12  ;;  %v762_v61 = vstv %s2090_s20  ;;  %v2486_v62 = vld [vmem:[#allocation2 + $0x1c] sm:$0xff]  ;;  %s2104_s20 = sld [smem:[#allocation7 + $0x1e]] }
  0xcd   :  { %v764_v0 = vmul.f32 %v762_v61, %v2484_v60 }
  0xd0   :  { %299 = vrot.lane.b32.xlu1 %v290_v2, %s2241_s9  ;;  %297 = vrot.lane.b32.xlu0 %v289_v3, %s2241_s9  ;;  %v763_v2 = vmul.f32 %v762_v61, %v2486_v62  ;;  %v2492_v3 = vld [vmem:[#allocation2 + $0x84] sm:$0xff] }
  0xd4   :  { %303 = vrot.lane.b32.xlu1 %v292_v6, %s2241_s9  ;;  %301 = vrot.lane.b32.xlu0 %v291_v7, %s2241_s9  ;;  %v2494_v6 = vld [vmem:[#allocation2 + $0x7c] sm:$0xff]  ;;  %v766_v7 = vmul.f32 %v762_v61, %v2492_v3 }
  0xd5   :  { %v765_v8 = vmul.f32 %v762_v61, %v2494_v6 }
  0xd8   :  { %325 = vrot.lane.b32.xlu1 %v316_v9, %s2242_s12  ;;  %323 = vrot.lane.b32.xlu0 %v315_v11, %s2242_s12  ;;  %v788_v9 = vstv %s2091_s21  ;;  %s2098_s21 = sld [smem:[#allocation7 + $0x18]] }
  0xd9   :  { %v790_v11 = vmul.f32 %v788_v9, %v2484_v60  ;;  %v791_v15 = vmul.f32 %v788_v9, %v2494_v6 }
  0xdc   :  { %329 = vrot.lane.b32.xlu1 %v318_v12, %s2242_s12  ;;  %327 = vrot.lane.b32.xlu0 %v317_v13, %s2242_s12  ;;  %v789_v12 = vmul.f32 %v788_v9, %v2486_v62  ;;  %v792_v13 = vmul.f32 %v788_v9, %v2492_v3 }
  0xe0   :  { %365 = vrot.lane.b32.xlu1 %v356_v17, %s2241_s9  ;;  %363 = vrot.lane.b32.xlu0 %v355_v18, %s2241_s9  ;;  %v2508_v17 = vld [vmem:[#allocation2 + $0x38] sm:$0xff]  ;;  %v1031_v18 = vstv %s2093_s22  ;;  %s2250_s22 = smov 80  }
  0xe4   :  { %369 = vrot.lane.b32.xlu1 %v358_v21, %s2241_s9  ;;  %367 = vrot.lane.b32.xlu0 %v357_v22, %s2241_s9  ;;  %v2510_v21 = vld [vmem:[#allocation2 + $0x30] sm:$0xff]  ;;  %v2514_v22 = vld [vmem:[#allocation2 + $0x98] sm:$0xff] }
  0xe8   :  { %391 = vrot.lane.b32.xlu1 %v382_v24, %s2242_s12  ;;  %389 = vrot.lane.b32.xlu0 %v381_v25, %s2242_s12  ;;  %v1033_v24 = vmul.f32 %v1031_v18, %v2508_v17  ;;  %v1032_v25 = vmul.f32 %v1031_v18, %v2510_v21 }
  0xec   :  { %395 = vrot.lane.b32.xlu1 %v384_v26, %s2242_s12  ;;  %393 = vrot.lane.b32.xlu0 %v383_v27, %s2242_s12  ;;  %v1035_v26 = vmul.f32 %v1031_v18, %v2514_v22  ;;  %v1034_v27 = vmul.f32 %v1031_v18, %v2516_v23 }
  0xf0   :  { %641 = vrot.lane.b32.xlu1 %v632_v33, %s2241_s9  ;;  %639 = vrot.lane.b32.xlu0 %v631_v34, %s2241_s9  ;;  %v1059_v33 = vmul.f32 %v1057_v29, %v2508_v17  ;;  %v1058_v34 = vmul.f32 %v1057_v29, %v2510_v21 }
  0xf4   :  { %645 = vrot.lane.b32.xlu1 %v634_v35, %s2241_s9  ;;  %643 = vrot.lane.b32.xlu0 %v633_v36, %s2241_s9  ;;  %v1061_v35 = vmul.f32 %v1057_v29, %v2514_v22  ;;  %v1060_v36 = vmul.f32 %v1057_v29, %v2516_v23 }
  0xf8   :  { %667 = vrot.lane.b32.xlu1 %v658_v38, %s2242_s12  ;;  %665 = vrot.lane.b32.xlu0 %v657_v39, %s2242_s12  ;;  %v1432_v38 = vstv %s2102_s25  ;;  %v2534_v39 = vld [vmem:[#allocation2 + $0x48] sm:$0xff]  ;;  %s2107_s25 = sld [smem:[#allocation7 + $0x21]] }
  0xf9   :  { %v1434_v45 = vmul.f32 %v1432_v38, %v2532_v37 }
  0xfc   :  { %671 = vrot.lane.b32.xlu1 %v660_v41, %s2242_s12  ;;  %669 = vrot.lane.b32.xlu0 %v659_v42, %s2242_s12  ;;  %v2538_v41 = vld [vmem:[#allocation2 + $0xb0] sm:$0xff]  ;;  %v2540_v42 = vld [vmem:[#allocation2 + $0xa8] sm:$0xff] }
 0x100   :  { %707 = vrot.lane.b32.xlu1 %v698_v47, %s2241_s9  ;;  %705 = vrot.lane.b32.xlu0 %v697_v48, %s2241_s9  ;;  %v1433_v47 = vmul.f32 %v1432_v38, %v2534_v39  ;;  %v1436_v48 = vmul.f32 %v1432_v38, %v2538_v41 }
 0x104   :  { %711 = vrot.lane.b32.xlu1 %v700_v53, %s2241_s9  ;;  %709 = vrot.lane.b32.xlu0 %v699_v54, %s2241_s9  ;;  %v1435_v53 = vmul.f32 %v1432_v38, %v2540_v42 }
 0x108   :  { %733 = vrot.lane.b32.xlu1 %v724_v56, %s2242_s12  ;;  %731 = vrot.lane.b32.xlu0 %v723_v57, %s2242_s12  ;;  %v1458_v56 = vstv %s2103_s26  ;;  %v212_v57 = vstv %s211_s27  ;;  %s3131_s26 = sld [smem:[#allocation8]] }
 0x109   :  { %v1460_v61 = vmul.f32 %v1458_v56, %v2532_v37  ;;  %v1462_v18 = vmul.f32 %v1458_v56, %v2538_v41  ;;  %s3134_s27 = sld [smem:[#allocation8 + $0x4]] }
 0x10c   :  { %737 = vrot.lane.b32.xlu1 %v726_v58, %s2242_s12  ;;  %735 = vrot.lane.b32.xlu0 %v725_v59, %s2242_s12 }
 0x110   :  { %773 = vrot.lane.b32.xlu1 %v764_v0, %s2241_s9  ;;  %771 = vrot.lane.b32.xlu0 %v763_v2, %s2241_s9  ;;  %v1459_v0 = vmul.f32 %v1458_v56, %v2534_v39  ;;  %v213_v2 = vmul.f32 %v212_v57, %v2354_v40 }
 0x114   :  { %777 = vrot.lane.b32.xlu1 %v766_v7, %s2241_s9  ;;  %775 = vrot.lane.b32.xlu0 %v765_v8, %s2241_s9  ;;  %v214_v7 = vmul.f32 %v212_v57, %v2360_v44  ;;  %v278_v8 = vstv %s2077_s28  ;;  %v216_v44 = vmul.f32 %v212_v57, %v2370_v50  ;;  %s3138_s28 = sld [smem:[#allocation8 + $0x8]] }
 0x115   :  { %v279_v40 = vmul.f32 %v278_v8, %v2390_v1 }
 0x118   :  { %799 = vrot.lane.b32.xlu1 %v790_v11, %s2242_s12  ;;  %797 = vrot.lane.b32.xlu0 %v789_v12, %s2242_s12  ;;  %v1097_v12 = vstv %s2096_s29  ;;  %s3141_s29 = sld [smem:[#allocation8 + $0xc]] }
 0x11c   :  { %803 = vrot.lane.b32.xlu1 %v792_v13, %s2242_s12  ;;  %801 = vrot.lane.b32.xlu0 %v791_v15, %s2242_s12 }
 0x120   :  { %1042 = vrot.lane.b32.xlu1 %v1033_v24, %s2241_s9  ;;  %1040 = vrot.lane.b32.xlu0 %v1032_v25, %s2241_s9  ;;  %v1461_v24 = vmul.f32 %v1458_v56, %v2540_v42  ;;  %v280_v25 = vmul.f32 %v278_v8, %v2388_v63  ;;  %v281_v56 = vmul.f32 %v278_v8, %v2398_v5 }
 0x124   :  { %1046 = vrot.lane.b32.xlu1 %v1035_v26, %s2241_s9  ;;  %1044 = vrot.lane.b32.xlu0 %v1034_v27, %s2241_s9  ;;  %v215_v26 = vmul.f32 %v212_v57, %v2372_v51 }
 0x126   :  { %v232_v54 = vpop.permute.xlu0 %231 }
 0x127   :  { %v243_v9 = vadd.f32 %v232_v54, %v213_v2  ;;  %v2572_v54 = vld [vmem:[#allocation2 + $0x92] sm:$0xff] }
 0x128   :  { %1068 = vrot.lane.b32.xlu1 %v1059_v33, %s2242_s12  ;;  %1066 = vrot.lane.b32.xlu0 %v1058_v34, %s2242_s12  ;;  %v2562_v33 = vld [vmem:[#allocation2 + $0x3a] sm:$0xff]  ;;  %v2564_v34 = vld [vmem:[#allocation2 + $0x32] sm:$0xff]  ;;  %v1100_v2 = vmul.f32 %v1097_v12, %v2572_v54 }
 0x129   :  { %v1099_v50 = vmul.f32 %v1097_v12, %v2562_v33  ;;  %v1098_v51 = vmul.f32 %v1097_v12, %v2564_v34 }
 0x12a   :  { %v234_v55 = vpop.permute.xlu1 %233 }
 0x12b   :  { %v244_v11 = vadd.f32 %v234_v55, %v214_v7  ;;  %v282_v55 = vmul.f32 %v278_v8, %v2396_v4  ;;  %v1123_v7 = vstv %s2097_s30  ;;  %s3146_s30 = sld [smem:[#allocation8 + $0x1]] }
 0x12c   :  { %1072 = vrot.lane.b32.xlu1 %v1061_v35, %s2242_s12  ;;  %1070 = vrot.lane.b32.xlu0 %v1060_v36, %s2242_s12  ;;  %v1125_v8 = vmul.f32 %v1123_v7, %v2562_v33 }
 0x130   :  { %1443 = vrot.lane.b32.xlu1 %v1434_v45, %s2241_s9  ;;  %1441 = vrot.lane.b32.xlu0 %v1433_v47, %s2241_s9 }
 0x134   :  { %1447 = vrot.lane.b32.xlu1 %v1436_v48, %s2241_s9  ;;  %1445 = vrot.lane.b32.xlu0 %v1435_v53, %s2241_s9  ;;  %v2570_v53 = vld [vmem:[#allocation2 + $0x9a] sm:$0xff] }
 0x136   :  { %v238_v58 = vpop.permute.xlu1 %237  ;;  %v236_v59 = vpop.permute.xlu0 %235 }
 0x137   :  { %v246_v35 = vadd.f32 %v238_v58, %v216_v44  ;;  %v245_v36 = vadd.f32 %v236_v59, %v215_v26 }
 0x138   :  { %1469 = vrot.lane.b32.xlu1 %v1460_v61, %s2242_s12  ;;  %1467 = vrot.lane.b32.xlu0 %v1459_v0, %s2242_s12  ;;  %v1101_v0 = vmul.f32 %v1097_v12, %v2570_v53 }
 0x13a   :  { %v260_v13 = vpop.permute.xlu1 %259  ;;  %v258_v15 = vpop.permute.xlu0 %257 }
 0x13b   :  { %v270_v27 = vadd.f32 %v260_v13, %v244_v11  ;;  %v269_v29 = vadd.f32 %v258_v15, %v243_v9  ;;  %v1124_v9 = vmul.f32 %v1123_v7, %v2564_v34  ;;  %v344_v11 = vstv %s2080_s5  ;;  %s3151_s5 = sld [smem:[#allocation8 + $0x5]] }
 0x13c   :  { %1473 = vrot.lane.b32.xlu1 %v1462_v18, %s2242_s12  ;;  %1471 = vrot.lane.b32.xlu0 %v1461_v24, %s2242_s12  ;;  %v1127_v24 = vmul.f32 %v1123_v7, %v2570_v53 }
 0x13d   :  { %v284_v63 = vadd.f32 %v280_v25, %v270_v27  ;;  %v283_v38 = vadd.f32 %v279_v40, %v269_v29  ;;  %v1126_v25 = vmul.f32 %v1123_v7, %v2572_v54  ;;  %v1498_v40 = vstv %s2105_s6  ;;  %v2588_v27 = vld [vmem:[#allocation2 + $0x52] sm:$0xff]  ;;  %v2590_v29 = vld [vmem:[#allocation2 + $0x4a] sm:$0xff]  ;;  %s3153_s6 = sld [smem:[#allocation8 + $0x9]] }
 0x13e   :  { %v264_v1 = vpop.permute.xlu1 %263  ;;  %v262_v45 = vpop.permute.xlu0 %261 }
 0x13f   :  { %v272_v47 = vadd.f32 %v264_v1, %v246_v35  ;;  %v271_v48 = vadd.f32 %v262_v45, %v245_v36  ;;  %v346_v35 = vmul.f32 %v344_v11, %v2412_v14  ;;  %v345_v36 = vmul.f32 %v344_v11, %v2414_v16  ;;  %v2598_v14 = vld [vmem:[#allocation2 + $0xb2] sm:$0xff]  ;;  %v2600_v16 = vld [vmem:[#allocation2 + $0xaa] sm:$0xff] }
 0x140   :  { %1108 = vrot.lane.b32.xlu1 %v1099_v50, %s2241_s9  ;;  %1106 = vrot.lane.b32.xlu0 %v1098_v51, %s2241_s9  ;;  %v1502_v7 = vmul.f32 %v1498_v40, %v2598_v14 }
 0x141   :  { %v286_v57 = vadd.f32 %v282_v55, %v272_v47  ;;  %v285_v58 = vadd.f32 %v281_v56, %v271_v48  ;;  %v1500_v47 = vmul.f32 %v1498_v40, %v2588_v27  ;;  %v1499_v48 = vmul.f32 %v1498_v40, %v2590_v29 }
 0x142   :  { %v300_v59 = vpop.permute.xlu1 %299  ;;  %v298_v61 = vpop.permute.xlu0 %297 }
 0x143   :  { %v310_v13 = vadd.f32 %v300_v59, %v284_v63  ;;  %v309_v15 = vadd.f32 %v298_v61, %v283_v38  ;;  %v348_v59 = vmul.f32 %v344_v11, %v2420_v19  ;;  %v347_v61 = vmul.f32 %v344_v11, %v2422_v20 }
 0x144   :  { %1112 = vrot.lane.b32.xlu1 %v1101_v0, %s2241_s9  ;;  %1110 = vrot.lane.b32.xlu0 %v1100_v2, %s2241_s9  ;;  %v2243_v19 = vmov 1983009808  }
 0x145   :  { %v407_v20 = vunpack.c.l.s4 %v2243_v19  ;;  %v1189_v19 = vstv %s2617_s1  ;;  %s3203_s1 = sld [smem:[#allocation8 + $0x6]] }
 0x146   :  { %v304_v4 = vpop.permute.xlu1 %303  ;;  %v302_v5 = vpop.permute.xlu0 %301 }
 0x147   :  { %v312_v63 = vadd.f32 %v304_v4, %v286_v57  ;;  %v311_v38 = vadd.f32 %v302_v5, %v285_v58  ;;  %v1501_v4 = vmul.f32 %v1498_v40, %v2600_v16  ;;  %v1524_v5 = vstv %s2106_s7  ;;  %s3155_s7 = sld [smem:[#allocation8 + $0xd]] }
 0x148   :  { %1134 = vrot.lane.b32.xlu1 %v1125_v8, %s2242_s12  ;;  %1132 = vrot.lane.b32.xlu0 %v1124_v9, %s2242_s12  ;;  %v3325_v8 = vlaneseq }
 0x14a   :  { %v326_v12 = vpop.permute.xlu1 %325  ;;  %v324_v18 = vpop.permute.xlu0 %323 }
 0x14b   :  { %v336_v44 = vadd.f32 %v326_v12, %v310_v13  ;;  %v335_v26 = vadd.f32 %v324_v18, %v309_v15  ;;  %v1526_v13 = vmul.f32 %v1524_v5, %v2588_v27  ;;  %v1525_v15 = vmul.f32 %v1524_v5, %v2590_v29 }
 0x14c   :  { %1138 = vrot.lane.b32.xlu1 %v1127_v24, %s2242_s12  ;;  %1136 = vrot.lane.b32.xlu0 %v1126_v25, %s2242_s12  ;;  %v408_v12 = vunpack.c.0.s8 %v407_v20  ;;  %v2615_v18 = vshrl.u32 %v3325_v8, 7 }
 0x14d   :  { %v350_v1 = vadd.f32 %v346_v35, %v336_v44  ;;  %v349_v45 = vadd.f32 %v345_v36, %v335_v26  ;;  %v1528_v26 = vmul.f32 %v1524_v5, %v2598_v14  ;;  %v1527_v35 = vmul.f32 %v1524_v5, %v2600_v16  ;;  %v2638_v5 = vld [vmem:[#allocation2 + $0x94] sm:$0xff] }
 0x14e   :  { %v330_v50 = vpop.permute.xlu1 %329  ;;  %v328_v51 = vpop.permute.xlu0 %327 }
 0x14f   :  { %v338_v55 = vadd.f32 %v330_v50, %v312_v63  ;;  %v337_v56 = vadd.f32 %v328_v51, %v311_v38  ;;  %v2621_v38 = vld [vmem:[#allocation2 + $0x3c] sm:$0xff]  ;;  %v1163_v50 = vstv %s2099_s0  ;;  %v2623_v51 = vld [vmem:[#allocation2 + $0x34] sm:$0xff]  ;;  %s3201_s0 = sld [smem:[#allocation8 + $0x2]] }
 0x150   :  { %1509 = vrot.lane.b32.xlu1 %v1500_v47, %s2241_s9  ;;  %1507 = vrot.lane.b32.xlu0 %v1499_v48, %s2241_s9  ;;  %v2626_v47 = vsub.s32 %v408_v12, %v2615_v18  ;;  %v2632_v48 = vld [vmem:[#allocation2 + $0x9c] sm:$0xff] }
 0x151   :  { %v352_v57 = vadd.f32 %v348_v59, %v338_v55  ;;  %v351_v58 = vadd.f32 %v347_v61, %v337_v56 }
 0x152   :  { %v366_v0 = vpop.permute.xlu1 %365  ;;  %v364_v2 = vpop.permute.xlu0 %363 }
 0x153   :  { %v376_v24 = vadd.f32 %v366_v0, %v350_v1  ;;  %v375_v25 = vadd.f32 %v364_v2, %v349_v45  ;;  %v1165_v0 = vmul.f32 %v1163_v50, %v2621_v38  ;;  %v1164_v2 = vmul.f32 %v1163_v50, %v2623_v51 }
 0x154   :  { %1513 = vrot.lane.b32.xlu1 %v1502_v7, %s2241_s9  ;;  %1511 = vrot.lane.b32.xlu0 %v1501_v4, %s2241_s9 }
 0x156   :  { %v370_v9 = vpop.permute.xlu1 %369  ;;  %v368_v11 = vpop.permute.xlu0 %367 }
 0x157   :  { %v378_v1 = vadd.f32 %v370_v9, %v352_v57  ;;  %v377_v45 = vadd.f32 %v368_v11, %v351_v58  ;;  %v1167_v58 = vmul.f32 %v1163_v50, %v2632_v48 }
 0x158   :  { %1535 = vrot.lane.b32.xlu1 %v1526_v13, %s2242_s12  ;;  %1533 = vrot.lane.b32.xlu0 %v1525_v15, %s2242_s12 }
 0x15a   :  { %v392_v40 = vpop.permute.xlu1 %391  ;;  %v390_v44 = vpop.permute.xlu0 %389 }
 0x15b   :  { %v402_v36 = vadd.f32 %v392_v40, %v376_v24  ;;  %v401_v63 = vadd.f32 %v390_v44, %v375_v25  ;;  %v1166_v44 = vmul.f32 %v1163_v50, %v2638_v5  ;;  %v620_v50 = vstv %s2630_s3  ;;  %s3205_s3 = sld [smem:[#allocation8 + $0xa]] }
 0x15c   :  { %1539 = vrot.lane.b32.xlu1 %v1528_v26, %s2242_s12  ;;  %1537 = vrot.lane.b32.xlu0 %v1527_v35, %s2242_s12 }
 0x15d   :  { %v471_v55 = vcombine.high %v402_v36, %v3326_v10  ;;  %v405_v56 = vcombine.high %v401_v63, %v3326_v10  ;;  %v2643_v57 = vrot.slane %v402_v36, %v2626_v47  ;;  %v2663_v12 = vrot.slane %v401_v63, %v2626_v47 }
 0x15e   :  { %v396_v59 = vpop.permute.xlu1 %395  ;;  %v394_v61 = vpop.permute.xlu0 %393  ;;  %v623_v63 = vmul.f32 %v620_v50, %v2444_v32 }
 0x15f   :  { %v404_v7 = vadd.f32 %v396_v59, %v378_v1  ;;  %v403_v4 = vadd.f32 %v394_v61, %v377_v45  ;;  %v2660_v15 = vrot.slane %v471_v55, %v2626_v47  ;;  %v2666_v24 = vrot.slane %v405_v56, %v2626_v47 }
 0x160   :  { %1174 = vrot.lane.b32.xlu1 %v1165_v0, %s2241_s9  ;;  %1172 = vrot.lane.b32.xlu0 %v1164_v2, %s2241_s9  ;;  %v624_v55 = vmul.f32 %v620_v50, %v2442_v31  ;;  %v1193_v59 = vmul.f32 %v1189_v19, %v2632_v48 }
 0x161   :  { %v486_v20 = vcombine.high %v404_v7, %v3326_v10  ;;  %v2651_v9 = vrot.slane %v404_v7, %v2626_v47  ;;  %v420_v11 = vcombine.high %v403_v4, %v3326_v10  ;;  %v2655_v13 = vrot.slane %v403_v4, %v2626_v47 }
 0x162   :  { %v642_v25 = vpop.permute.xlu1 %641  ;;  %v640_v40 = vpop.permute.xlu0 %639  ;;  %v1191_v7 = vmul.f32 %v1189_v19, %v2621_v38  ;;  %v622_v4 = vmul.f32 %v620_v50, %v2436_v28 }
 0x163   :  { %v2670_v26 = vrot.slane %v486_v20, %v2626_v47  ;;  %v2677_v1 = vrot.slane %v420_v11, %v2626_v47  ;;  %v436_v45 = vcombine.high %v2663_v12, %v2655_v13  ;;  %v1190_v20 = vmul.f32 %v1189_v19, %v2623_v51 }
 0x164   :  { %1178 = vrot.lane.b32.xlu1 %v1167_v58, %s2241_s9  ;;  %1176 = vrot.lane.b32.xlu0 %v1166_v44, %s2241_s9  ;;  %v621_v58 = vmul.f32 %v620_v50, %v2438_v30  ;;  %v686_v11 = vstv %s2640_s8  ;;  %v652_v8 = vadd.f32 %v642_v25, %v622_v4  ;;  %v1564_v44 = vstv %s2657_s10  ;;  %s3207_s8 = sld [smem:[#allocation8 + $0xe]] }
 0x165   :  { %v688_v28 = vmul.f32 %v686_v11, %v2460_v43  ;;  %v687_v30 = vmul.f32 %v686_v11, %v2462_v46  ;;  %v1192_v25 = vmul.f32 %v1189_v19, %v2638_v5  ;;  %v690_v19 = vmul.f32 %v686_v11, %v2468_v49  ;;  %s3209_s10 = sld [smem:[#allocation8 + $0x3]] }
 0x166   :  { %v646_v0 = vpop.permute.xlu1 %645  ;;  %v644_v2 = vpop.permute.xlu0 %643  ;;  %v651_v56 = vadd.f32 %v640_v40, %v621_v58  ;;  %v2708_v40 = vld [vmem:[#allocation2 + $0x54] sm:$0xff] }
 0x167   :  { %v654_v31 = vadd.f32 %v646_v0, %v624_v55  ;;  %v653_v4 = vadd.f32 %v644_v2, %v623_v63  ;;  %v1566_v32 = vmul.f32 %v1564_v44, %v2708_v40  ;;  %v2721_v63 = vld [vmem:[#allocation2 + $0xac] sm:$0xff]  ;;  %v2244_v55 = vmov 1934713408  }
 0x168   :  { %1200 = vrot.lane.b32.xlu1 %v1191_v7, %s2242_s12  ;;  %1198 = vrot.lane.b32.xlu0 %v1190_v20, %s2242_s12  ;;  %v2710_v7 = vld [vmem:[#allocation2 + $0x4c] sm:$0xff] }
 0x16a   :  { %v668_v61 = vpop.permute.xlu1 %667  ;;  %v666_v35 = vpop.permute.xlu0 %665 }
 0x16b   :  { %v678_v10 = vadd.f32 %v668_v61, %v652_v8  ;;  %v677_v36 = vadd.f32 %v666_v35, %v651_v56  ;;  %v1565_v8 = vmul.f32 %v1564_v44, %v2710_v7  ;;  %v2717_v56 = vld [vmem:[#allocation2 + $0xb4] sm:$0xff]  ;;  %v438_v61 = vunpack.c.l.s4 %v2244_v55 }
 0x16c   :  { %1204 = vrot.lane.b32.xlu1 %v1193_v59, %s2242_s12  ;;  %1202 = vrot.lane.b32.xlu0 %v1192_v25, %s2242_s12  ;;  %v689_v59 = vmul.f32 %v686_v11, %v2470_v52  ;;  %v1568_v49 = vmul.f32 %v1564_v44, %v2717_v56 }
 0x16d   :  { %v692_v43 = vadd.f32 %v688_v28, %v678_v10  ;;  %v691_v58 = vadd.f32 %v687_v30, %v677_v36  ;;  %v1567_v28 = vmul.f32 %v1564_v44, %v2721_v63  ;;  %v1590_v30 = vstv %s2109_s11  ;;  %s3211_s11 = sld [smem:[#allocation10]] }
 0x16e   :  { %v672_v46 = vpop.permute.xlu1 %671  ;;  %v670_v20 = vpop.permute.xlu0 %669  ;;  %v439_v52 = vunpack.c.0.s8 %v438_v61  ;;  %v1593_v61 = vmul.f32 %v1590_v30, %v2721_v63 }
 0x16f   :  { %v680_v35 = vadd.f32 %v672_v46, %v654_v31  ;;  %v679_v50 = vadd.f32 %v670_v20, %v653_v4  ;;  %v1592_v31 = vmul.f32 %v1590_v30, %v2708_v40  ;;  %v1591_v4 = vmul.f32 %v1590_v30, %v2710_v7 }
 0x170   :  { %1575 = vrot.lane.b32.xlu1 %v1566_v32, %s2241_s9  ;;  %1573 = vrot.lane.b32.xlu0 %v1565_v8, %s2241_s9  ;;  %v752_v46 = vstv %s2089_s13  ;;  %v2733_v44 = vsub.s32 %v439_v52, %v2615_v18  ;;  %s3213_s13 = sld [smem:[#allocation8 + $0x7]] }
 0x171   :  { %v694_v10 = vadd.f32 %v690_v19, %v680_v35  ;;  %v693_v36 = vadd.f32 %v689_v59, %v679_v50  ;;  %v1594_v35 = vmul.f32 %v1590_v30, %v2717_v56  ;;  %v754_v50 = vmul.f32 %v752_v46, %v2484_v60 }
 0x172   :  { %v708_v0 = vpop.permute.xlu1 %707  ;;  %v706_v2 = vpop.permute.xlu0 %705  ;;  %v2745_v60 = vrot.slane %v436_v45, %v2733_v44  ;;  %v756_v30 = vmul.f32 %v752_v46, %v2492_v3 }
 0x173   :  { %v718_v20 = vadd.f32 %v708_v0, %v692_v43  ;;  %v717_v32 = vadd.f32 %v706_v2, %v691_v58 }
 0x174   :  { %1579 = vrot.lane.b32.xlu1 %v1568_v49, %s2241_s9  ;;  %1577 = vrot.lane.b32.xlu0 %v1567_v28, %s2241_s9  ;;  %v753_v49 = vmul.f32 %v752_v46, %v2486_v62  ;;  %s2245_s9 = smov 32  }
 0x176   :  { %v712_v11 = vpop.permute.xlu1 %711  ;;  %v710_v25 = vpop.permute.xlu0 %709 }
 0x177   :  { %v720_v43 = vadd.f32 %v712_v11, %v694_v10  ;;  %v719_v58 = vadd.f32 %v710_v25, %v693_v36  ;;  %v3328_v10 = vcombine.high %v2643_v57, %v2651_v9  ;;  %v755_v11 = vmul.f32 %v752_v46, %v2494_v6 }
 0x178   :  { %1601 = vrot.lane.b32.xlu1 %v1592_v31, %s2242_s12  ;;  %1599 = vrot.lane.b32.xlu0 %v1591_v4, %s2242_s12 }
 0x179   :  { %v2752_v36 = vrot.slane %v3328_v10, %v2733_v44 }
 0x17a   :  { %v734_v8 = vpop.permute.xlu1 %733  ;;  %v732_v19 = vpop.permute.xlu0 %731 }
 0x17b   :  { %v744_v59 = vadd.f32 %v734_v8, %v718_v20  ;;  %v743_v55 = vadd.f32 %v732_v19, %v717_v32 }
 0x17c   :  { %1605 = vrot.lane.b32.xlu1 %v1594_v35, %s2242_s12  ;;  %1603 = vrot.lane.b32.xlu0 %v1593_v61, %s2242_s12  ;;  %s2092_s12 = sld [smem:[#allocation7 + $0x12]]  ;;  %v3329_v61 = vmov 0.0  }
 0x17d   :  { %v758_v0 = vadd.f32 %v754_v50, %v744_v59  ;;  %v757_v2 = vadd.f32 %v753_v49, %v743_v55 }
 0x17e   :  { %v738_v28 = vpop.permute.xlu1 %737  ;;  %v736_v52 = vpop.permute.xlu0 %735 }
 0x17f   :  { %v746_v31 = vadd.f32 %v738_v28, %v720_v43  ;;  %v745_v62 = vadd.f32 %v736_v52, %v719_v58 }
 0x180   :  { %542 = vrot.lane.b32.xlu1 %v2745_v60, %s2245_s9  ;;  %570 = vrot.lane.b32.xlu0 %v2752_v36, %s2245_s9 }
 0x181   :  { %v760_v45 = vadd.f32 %v756_v30, %v746_v31  ;;  %v759_v25 = vadd.f32 %v755_v11, %v745_v62 }
 0x182   :  { %v774_v3 = vpop.permute.xlu1 %773  ;;  %v772_v4 = vpop.permute.xlu0 %771 }
 0x183   :  { %v784_v8 = vadd.f32 %v774_v3, %v758_v0  ;;  %v783_v19 = vadd.f32 %v772_v4, %v757_v2 }
 0x186   :  { %v778_v20 = vpop.permute.xlu1 %777  ;;  %v776_v32 = vpop.permute.xlu0 %775 }
 0x187   :  { %v786_v6 = vadd.f32 %v778_v20, %v760_v45  ;;  %v785_v46 = vadd.f32 %v776_v32, %v759_v25 }
 0x18a   :  { %v800_v35 = vpop.permute.xlu1 %799  ;;  %v798_v50 = vpop.permute.xlu0 %797 }
 0x18b   :  { %v810_v59 = vadd.f32 %v800_v35, %v784_v8  ;;  %v809_v55 = vadd.f32 %v798_v50, %v783_v19 }
 0x18d   :  { %v879_v49 = vcombine.high %v810_v59, %v3329_v61  ;;  %v813_v43 = vcombine.high %v809_v55, %v3329_v61  ;;  %v2762_v31 = vrot.slane %v810_v59, %v2626_v47  ;;  %v2778_v45 = vrot.slane %v809_v55, %v2626_v47 }
 0x18e   :  { %v804_v58 = vpop.permute.xlu1 %803  ;;  %v802_v28 = vpop.permute.xlu0 %801  ;;  %v1021_v59 = vstv %s2092_s12  ;;  %s3219_s12 = sld [smem:[#allocation8 + $0xb]] }
 0x18f   :  { %v812_v52 = vadd.f32 %v804_v58, %v786_v6  ;;  %v811_v30 = vadd.f32 %v802_v28, %v785_v46  ;;  %v2775_v11 = vrot.slane %v879_v49, %v2626_v47  ;;  %v2781_v25 = vrot.slane %v813_v43, %v2626_v47 }
 0x190   :  { %v3330_v49 = vcombine.low %v2663_v12, %v2655_v13  ;;  %v1087_v13 = vstv %s2764_s14  ;;  %s3222_s14 = sld [smem:[#allocation10 + $0x2]] }
 0x191   :  { %v894_v0 = vcombine.high %v812_v52, %v3329_v61  ;;  %v2768_v2 = vrot.slane %v812_v52, %v2626_v47  ;;  %v828_v62 = vcombine.high %v811_v30, %v3329_v61  ;;  %v2772_v10 = vrot.slane %v811_v30, %v2626_v47 }
 0x192   :  { %v1043_v3 = vpop.permute.xlu1 %1042  ;;  %v1041_v4 = vpop.permute.xlu0 %1040  ;;  %v2807_v43 = vrot.slane %v3330_v49, %v2733_v44  ;;  %v1025_v49 = vmul.f32 %v1021_v59, %v2514_v22 }
 0x193   :  { %v2784_v20 = vrot.slane %v894_v0, %v2626_v47  ;;  %v910_v8 = vcombine.high %v2762_v31, %v2768_v2  ;;  %v2791_v19 = vrot.slane %v828_v62, %v2626_v47  ;;  %v843_v35 = vcombine.low %v2778_v45, %v2772_v10 }
 0x194   :  { %v844_v50 = vcombine.high %v2778_v45, %v2772_v10  ;;  %v1023_v62 = vmul.f32 %v1021_v59, %v2508_v17  ;;  %v1022_v10 = vmul.f32 %v1021_v59, %v2510_v21  ;;  %v467_v17 = vcombine.high %v2807_v43, %v3329_v61 }
 0x195   :  { %v859_v46 = vcombine.low %v2781_v25, %v2791_v19  ;;  %v2812_v30 = vrot.slane %v910_v8, %v2733_v44  ;;  %v1024_v8 = vmul.f32 %v1021_v59, %v2516_v23  ;;  %v3331_v21 = vcombine.low %v2666_v24, %v2677_v1 }
 0x196   :  { %v1047_v28 = vpop.permute.xlu1 %1046  ;;  %v1045_v52 = vpop.permute.xlu0 %1044  ;;  %v2815_v0 = vrot.slane %v844_v50, %v2733_v44  ;;  %v1053_v12 = vadd.f32 %v1043_v3, %v1023_v62  ;;  %v1052_v45 = vadd.f32 %v1041_v4, %v1022_v10  ;;  %v1089_v3 = vmul.f32 %v1087_v13, %v2562_v33 }
 0x197   :  { %978 = vrot.lane.b32.xlu0 %v2812_v30, %s2245_s9  ;;  %v2832_v55 = vrot.slane %v3331_v21, %v2733_v44  ;;  %v1088_v4 = vmul.f32 %v1087_v13, %v2564_v34  ;;  %v1055_v22 = vadd.f32 %v1047_v28, %v1025_v49  ;;  %v1054_v23 = vadd.f32 %v1045_v52, %v1024_v8 }
 0x198   :  { %950 = vrot.lane.b32.xlu1 %v2815_v0, %s2245_s9  ;;  %v3332_v33 = vcombine.low %v2643_v57, %v2651_v9  ;;  %v3333_v28 = vcombine.high %v2666_v24, %v2677_v1  ;;  %v1090_v49 = vmul.f32 %v1087_v13, %v2572_v54  ;;  %v2878_v8 = vrot.slane %v843_v35, %v2733_v44 }
 0x199   :  { %v3335_v21 = vcombine.high %v2660_v15, %v2670_v26  ;;  %v1488_v35 = vstv %s2104_s20 }
 0x19a   :  { %v1069_v6 = vpop.permute.xlu1 %1068  ;;  %v1067_v50 = vpop.permute.xlu0 %1066  ;;  %v2855_v52 = vrot.slane %v3333_v28, %v2733_v44 }
 0x19b   :  { %v1079_v58 = vadd.f32 %v1069_v6, %v1053_v12  ;;  %v1078_v32 = vadd.f32 %v1067_v50, %v1052_v45  ;;  %538 = vrot.lane.b32.xlu0 %v467_v17, %s2246_s15  ;;  %v2847_v6 = vrot.slane %v3332_v33, %v2733_v44  ;;  %v468_v12 = vcombine.high %v2745_v60, %v3329_v61 }
 0x19c   :  { %550 = vrot.lane.b32.xlu1 %v2832_v55, %s2247_s16  ;;  %v1091_v45 = vmul.f32 %v1087_v13, %v2570_v53  ;;  %v3334_v53 = vcombine.low %v2660_v15, %v2670_v26  ;;  %v1422_v13 = vstv %s2101_s17  ;;  %s2253_s17 = smov [#allocation11]  }
 0x19d   :  { %v2839_v59 = vadd.f32 %v1089_v3, %v1079_v58  ;;  %v2841_v62 = vadd.f32 %v1088_v4, %v1078_v32  ;;  %v533_v54 = vcombine.high %v2847_v6, %v3329_v61  ;;  %v2884_v3 = vrot.slane %v3335_v21, %v2733_v44 }
 0x19e   :  { %v1073_v34 = vpop.permute.xlu1 %1072  ;;  %v1071_v10 = vpop.permute.xlu0 %1070  ;;  %v2870_v60 = vrot.slane %v3334_v53, %v2733_v44  ;;  %v534_v4 = vcombine.high %v2752_v36, %v3329_v61  ;;  %v1425_v15 = vmul.f32 %v1422_v13, %v2540_v42  ;;  %v875_v36 = vcombine.high %v2878_v8, %v3329_v61 }
 0x19f   :  { %v1081_v58 = vadd.f32 %v1073_v34, %v1055_v22  ;;  %v1080_v32 = vadd.f32 %v1071_v10, %v1054_v23  ;;  %546 = vrot.lane.b32.xlu0 %v468_v12, %s2248_s18  ;;  %v1424_v22 = vmul.f32 %v1422_v13, %v2532_v37  ;;  %v1423_v23 = vmul.f32 %v1422_v13, %v2534_v39 }
 0x1a0   :  { %558 = vrot.lane.b32.xlu1 %v2855_v52, %s2249_s19  ;;  %v1426_v10 = vmul.f32 %v1422_v13, %v2538_v41  ;;  %v867_v37 = vrot.slane %v859_v46, %v2733_v44  ;;  %v3336_v46 = vcombine.low %v2762_v31, %v2768_v2  ;;  %v3337_v53 = vcombine.high %v2781_v25, %v2791_v19 }
 0x1a1   :  { %v2862_v57 = vadd.f32 %v1091_v45, %v1081_v58  ;;  %v2864_v9 = vadd.f32 %v1090_v49, %v1080_v32  ;;  %v1490_v58 = vmul.f32 %v1488_v35, %v2588_v27  ;;  %v1489_v32 = vmul.f32 %v1488_v35, %v2590_v29 }
 0x1a2   :  { %v1444_v24 = vpop.permute.xlu1 %1443  ;;  %v1442_v1 = vpop.permute.xlu0 %1441  ;;  %v876_v29 = vcombine.high %v2815_v0, %v3329_v61  ;;  %v1491_v21 = vmul.f32 %v1488_v35, %v2600_v16  ;;  %v469_v25 = vcombine.high %v2832_v55, %v3329_v61  ;;  %v942_v19 = vcombine.high %v2812_v30, %v3329_v61 }
 0x1a3   :  { %578 = vrot.lane.b32.xlu0 %v2870_v60, %s2247_s16  ;;  %v1454_v33 = vadd.f32 %v1444_v24, %v1424_v22  ;;  %v1453_v34 = vadd.f32 %v1442_v1, %v1423_v23  ;;  %v2913_v24 = vrot.slane %v3336_v46, %v2733_v44  ;;  %v470_v23 = vcombine.high %v2855_v52, %v3329_v61 }
 0x1a4   :  { %566 = vrot.lane.b32.xlu1 %v533_v54, %s2246_s15  ;;  %v874_v54 = vrot.slane %v3337_v53, %v2733_v44  ;;  %v877_v30 = vcombine.high %v867_v37, %v3329_v61 }
 0x1a5   :  { %v941_v22 = vcombine.high %v2913_v24, %v3329_v61 }
 0x1a6   :  { %v1448_v50 = vpop.permute.xlu1 %1447  ;;  %v1446_v17 = vpop.permute.xlu0 %1445 }
 0x1a7   :  { %586 = vrot.lane.b32.xlu0 %v2884_v3, %s2249_s19  ;;  %v1456_v41 = vadd.f32 %v1448_v50, %v1426_v10  ;;  %v1455_v42 = vadd.f32 %v1446_v17, %v1425_v15  ;;  %v1492_v17 = vmul.f32 %v1488_v35, %v2598_v14  ;;  %v1153_v35 = vstv %s2098_s21 }
 0x1a8   :  { %574 = vrot.lane.b32.xlu1 %v534_v4, %s2248_s18  ;;  %v535_v15 = vcombine.high %v2870_v60, %v3329_v61  ;;  %v1155_v52 = vmul.f32 %v1153_v35, %v2621_v38 }
 0x1aa   :  { %v1470_v26 = vpop.permute.xlu1 %1469  ;;  %v1468_v12 = vpop.permute.xlu0 %1467 }
 0x1ab   :  { %v1480_v39 = vadd.f32 %v1470_v26, %v1454_v33  ;;  %v1479_v28 = vadd.f32 %v1468_v12, %v1453_v34  ;;  %946 = vrot.lane.b32.xlu0 %v875_v36, %s2246_s15  ;;  %v1154_v36 = vmul.f32 %v1153_v35, %v2623_v51  ;;  %v1157_v51 = vmul.f32 %v1153_v35, %v2632_v48 }
 0x1ac   :  { %958 = vrot.lane.b32.xlu1 %v867_v37, %s2247_s16  ;;  %v536_v37 = vcombine.high %v2884_v3, %v3329_v61  ;;  %v1554_v3 = vstv %s2107_s25 }
 0x1ad   :  { %v2905_v45 = vadd.f32 %v1490_v58, %v1480_v39  ;;  %v2907_v49 = vadd.f32 %v1489_v32, %v1479_v28  ;;  %v878_v32 = vcombine.high %v874_v54, %v3329_v61 }
 0x1ae   :  { %v1474_v1 = vpop.permute.xlu1 %1473  ;;  %v1472_v27 = vpop.permute.xlu0 %1471 }
 0x1af   :  { %v1482_v13 = vadd.f32 %v1474_v1, %v1456_v41  ;;  %v1481_v50 = vadd.f32 %v1472_v27, %v1455_v42  ;;  %954 = vrot.lane.b32.xlu0 %v876_v29, %s2248_s18  ;;  %v1156_v42 = vmul.f32 %v1153_v35, %v2638_v5 }
 0x1b0   :  { %966 = vrot.lane.b32.xlu1 %v874_v54, %s2249_s19 }
 0x1b1   :  { %v1496_v31 = vadd.f32 %v1492_v17, %v1482_v13  ;;  %v1495_v2 = vadd.f32 %v1491_v21, %v1481_v50  ;;  %v1556_v17 = vmul.f32 %v1554_v3, %v2708_v40  ;;  %v1555_v21 = vmul.f32 %v1554_v3, %v2710_v7 }
 0x1b2   :  { %v1109_v4 = vpop.permute.xlu1 %1108  ;;  %v1107_v0 = vpop.permute.xlu0 %1106 }
 0x1b3   :  { %554 = vrot.lane.b32.xlu0 %v469_v25, %s2250_s22  ;;  %v1119_v55 = vadd.f32 %v1109_v4, %v2839_v59  ;;  %v1118_v33 = vadd.f32 %v1107_v0, %v2841_v62 }
 0x1b4   :  { %974 = vrot.lane.b32.xlu1 %v941_v22, %s2246_s15 }
 0x1b6   :  { %v1113_v14 = vpop.permute.xlu1 %1112  ;;  %v1111_v16 = vpop.permute.xlu0 %1110 }
 0x1b7   :  { %562 = vrot.lane.b32.xlu0 %v470_v23, %s2251_s24  ;;  %v1121_v59 = vadd.f32 %v1113_v14, %v2862_v57  ;;  %v1120_v62 = vadd.f32 %v1111_v16, %v2864_v9 }
 0x1b8   :  { %982 = vrot.lane.b32.xlu1 %v942_v19, %s2248_s18 }
 0x1ba   :  { %v1135_v34 = vpop.permute.xlu1 %1134  ;;  %v1133_v10 = vpop.permute.xlu0 %1132 }
 0x1bb   :  { %v1145_v26 = vadd.f32 %v1135_v34, %v1119_v55  ;;  %v1144_v12 = vadd.f32 %v1133_v10, %v1118_v33  ;;  %962 = vrot.lane.b32.xlu0 %v877_v30, %s2250_s22 }
 0x1bc   :  { %582 = vrot.lane.b32.xlu1 %v535_v15, %s2250_s22 }
 0x1bd   :  { %v1159_v39 = vadd.f32 %v1155_v52, %v1145_v26  ;;  %v1158_v28 = vadd.f32 %v1154_v36, %v1144_v12 }
 0x1be   :  { %v1139_v58 = vpop.permute.xlu1 %1138  ;;  %v1137_v60 = vpop.permute.xlu0 %1136 }
 0x1bf   :  { %v1147_v38 = vadd.f32 %v1139_v58, %v1121_v59  ;;  %v1146_v41 = vadd.f32 %v1137_v60, %v1120_v62  ;;  %970 = vrot.lane.b32.xlu0 %v878_v32, %s2251_s24 }
 0x1c0   :  { %590 = vrot.lane.b32.xlu1 %v536_v37, %s2251_s24 }
 0x1c1   :  { %v1161_v57 = vadd.f32 %v1157_v51, %v1147_v38  ;;  %v1160_v9 = vadd.f32 %v1156_v42, %v1146_v41 }
 0x1c2   :  { %v1510_v46 = vpop.permute.xlu1 %1509  ;;  %v1508_v1 = vpop.permute.xlu0 %1507 }
 0x1c3   :  { %v1520_v53 = vadd.f32 %v1510_v46, %v2905_v45  ;;  %v1519_v54 = vadd.f32 %v1508_v1, %v2907_v49  ;;  %v1558_v45 = vmul.f32 %v1554_v3, %v2717_v56  ;;  %v1557_v49 = vmul.f32 %v1554_v3, %v2721_v63 }
 0x1c6   :  { %v1514_v27 = vpop.permute.xlu1 %1513  ;;  %v1512_v29 = vpop.permute.xlu0 %1511 }
 0x1c7   :  { %v1522_v4 = vadd.f32 %v1514_v27, %v1496_v31  ;;  %v1521_v0 = vadd.f32 %v1512_v29, %v1495_v2 }
 0x1ca   :  { %v1536_v13 = vpop.permute.xlu1 %1535  ;;  %v1534_v48 = vpop.permute.xlu0 %1533 }
 0x1cb   :  { %v1546_v50 = vadd.f32 %v1536_v13, %v1520_v53  ;;  %v1545_v5 = vadd.f32 %v1534_v48, %v1519_v54 }
 0x1cd   :  { %v1560_v22 = vadd.f32 %v1556_v17, %v1546_v50  ;;  %v1559_v25 = vadd.f32 %v1555_v21, %v1545_v5 }
 0x1ce   :  { %v1540_v14 = vpop.permute.xlu1 %1539  ;;  %v1538_v16 = vpop.permute.xlu0 %1537 }
 0x1cf   :  { %v1548_v19 = vadd.f32 %v1540_v14, %v1522_v4  ;;  %v1547_v23 = vadd.f32 %v1538_v16, %v1521_v0 }
 0x1d1   :  { %v1562_v35 = vadd.f32 %v1558_v45, %v1548_v19  ;;  %v1561_v55 = vadd.f32 %v1557_v49, %v1547_v23 }
 0x1d2   :  { %v1175_v33 = vpop.permute.xlu1 %1174  ;;  %v1173_v34 = vpop.permute.xlu0 %1172 }
 0x1d3   :  { %v1185_v15 = vadd.f32 %v1175_v33, %v1159_v39  ;;  %v1184_v7 = vadd.f32 %v1173_v34, %v1158_v28  ;;  %v3338_v33 = vcombine.low %v2775_v11, %v2784_v20 }
 0x1d5   :  { %v933_v34 = vrot.slane %v3338_v33, %v2733_v44 }
 0x1d6   :  { %v1179_v10 = vpop.permute.xlu1 %1178  ;;  %v1177_v40 = vpop.permute.xlu0 %1176 }
 0x1d7   :  { %v1187_v12 = vadd.f32 %v1179_v10, %v1161_v57  ;;  %v1186_v52 = vadd.f32 %v1177_v40, %v1160_v9 }
 0x1da   :  { %v1201_v31 = vpop.permute.xlu1 %1200  ;;  %v1199_v30 = vpop.permute.xlu0 %1198 }
 0x1db   :  { %v1211_v2 = vadd.f32 %v1201_v31, %v1185_v15  ;;  %v1210_v26 = vadd.f32 %v1199_v30, %v1184_v7  ;;  %v943_v30 = vcombine.high %v933_v34, %v3329_v61 }
 0x1dd   :  { %v1280_v59 = vcombine.high %v1211_v2, %v3329_v61  ;;  %v1214_v63 = vcombine.high %v1210_v26, %v3329_v61  ;;  %v1287_v60 = vrot.slane %v1211_v2, %v2626_v47  ;;  %v1221_v28 = vrot.slane %v1210_v26, %v2626_v47 }
 0x1de   :  { %v1205_v36 = vpop.permute.xlu1 %1204  ;;  %v1203_v62 = vpop.permute.xlu0 %1202 }
 0x1df   :  { %v1213_v56 = vadd.f32 %v1205_v36, %v1187_v12  ;;  %v1212_v58 = vadd.f32 %v1203_v62, %v1186_v52  ;;  %v2970_v51 = vrot.slane %v1280_v59, %v2626_v47  ;;  %v2976_v1 = vrot.slane %v1214_v63, %v2626_v47 }
 0x1e1   :  { %v1295_v37 = vcombine.high %v1213_v56, %v3329_v61  ;;  %v1302_v39 = vrot.slane %v1213_v56, %v2626_v47  ;;  %v1229_v32 = vcombine.high %v1212_v58, %v3329_v61  ;;  %v1236_v38 = vrot.slane %v1212_v58, %v2626_v47 }
 0x1e2   :  { %v1576_v41 = vpop.permute.xlu1 %1575  ;;  %v1574_v46 = vpop.permute.xlu0 %1573 }
 0x1e3   :  { %v2973_v42 = vrot.slane %v1295_v37, %v2626_v47  ;;  %v1310_v57 = vcombine.low %v1287_v60, %v1302_v39  ;;  %v1311_v9 = vcombine.high %v1287_v60, %v1302_v39  ;;  %v2979_v27 = vrot.slane %v1229_v32, %v2626_v47 }
 0x1e4   :  { %v1244_v29 = vcombine.low %v1221_v28, %v1236_v38  ;;  %v1245_v3 = vcombine.high %v1221_v28, %v1236_v38  ;;  %v1586_v14 = vadd.f32 %v1576_v41, %v1560_v22  ;;  %v1585_v16 = vadd.f32 %v1574_v46, %v1559_v25 }
 0x1e5   :  { %v2982_v53 = vrot.slane %v1310_v57, %v2733_v44  ;;  %v1326_v54 = vcombine.low %v2970_v51, %v2973_v42  ;;  %v1327_v13 = vcombine.high %v2970_v51, %v2973_v42  ;;  %v1260_v50 = vcombine.low %v2976_v1, %v2979_v27 }
 0x1e6   :  { %v2989_v48 = vrot.slane %v1244_v29, %v2733_v44  ;;  %v1261_v5 = vcombine.high %v2976_v1, %v2979_v27  ;;  %v1580_v17 = vpop.permute.xlu1 %1579  ;;  %v1578_v21 = vpop.permute.xlu0 %1577  ;;  %v1259_v23 = vrot.slane %v1245_v3, %v2733_v44  ;;  %v1325_v40 = vrot.slane %v1311_v9, %v2733_v44 }
 0x1e7   :  { %v1342_v4 = vcombine.high %v2982_v53, %v3329_v61  ;;  %v1588_v15 = vadd.f32 %v1580_v17, %v1562_v35  ;;  %v1587_v22 = vadd.f32 %v1578_v21, %v1561_v55 }
 0x1e8   :  { %v1276_v0 = vcombine.high %v2989_v48, %v3329_v61  ;;  %v1343_v55 = vcombine.high %v1325_v40, %v3329_v61  ;;  %v1277_v63 = vcombine.high %v1259_v23, %v3329_v61 }
 0x1e9   :  { %1375 = vrot.lane.b32.xlu1 %v1342_v4, %s2246_s15  ;;  %v1268_v4 = vrot.slane %v1260_v50, %v2733_v44 }
 0x1ea   :  { %1347 = vrot.lane.b32.xlu0 %v1276_v0, %s2246_s15  ;;  %v1602_v19 = vpop.permute.xlu1 %1601  ;;  %v1600_v49 = vpop.permute.xlu0 %1599  ;;  %v3339_v0 = vcombine.high %v2775_v11, %v2784_v20 }
 0x1eb   :  { %v1612_v45 = vadd.f32 %v1602_v19, %v1586_v14  ;;  %v1611_v10 = vadd.f32 %v1600_v49, %v1585_v16  ;;  %v1334_v19 = vrot.slane %v1326_v54, %v2733_v44  ;;  %v1278_v49 = vcombine.high %v1268_v4, %v3329_v61 }
 0x1ec   :  { %v940_v14 = vrot.slane %v3339_v0, %v2733_v44 }
 0x1ed   :  { %1351 = vrot.lane.b32.xlu1 %v1259_v23, %s2245_s9  ;;  %v1681_v7 = vcombine.high %v1612_v45, %v3329_v61  ;;  %v1615_v26 = vcombine.high %v1611_v10, %v3329_v61  ;;  %v1688_v52 = vrot.slane %v1612_v45, %v2626_v47  ;;  %v1622_v59 = vrot.slane %v1611_v10, %v2626_v47 }
 0x1ee   :  { %986 = vrot.lane.b32.xlu0 %v933_v34, %s2247_s16  ;;  %v1606_v25 = vpop.permute.xlu1 %1605  ;;  %v1604_v2 = vpop.permute.xlu0 %1603  ;;  %v944_v50 = vcombine.high %v940_v14, %v3329_v61  ;;  %v1344_v45 = vcombine.high %v1334_v19, %v3329_v61 }
 0x1ef   :  { %v1614_v31 = vadd.f32 %v1606_v25, %v1588_v15  ;;  %v1613_v12 = vadd.f32 %v1604_v2, %v1587_v22  ;;  %v3023_v58 = vrot.slane %v1681_v7, %v2626_v47  ;;  %v3029_v28 = vrot.slane %v1615_v26, %v2626_v47 }
 0x1f0   :  { %v1341_v25 = vrot.slane %v1327_v13, %v2733_v44 }
 0x1f1   :  { %v1696_v36 = vcombine.high %v1614_v31, %v3329_v61  ;;  %v1703_v35 = vrot.slane %v1614_v31, %v2626_v47  ;;  %990 = vrot.lane.b32.xlu1 %v943_v30, %s2250_s22  ;;  %v1630_v56 = vcombine.high %v1613_v12, %v3329_v61  ;;  %v1637_v62 = vrot.slane %v1613_v12, %v2626_v47 }
 0x1f2   :  { %1379 = vrot.lane.b32.xlu0 %v1325_v40, %s2245_s9  ;;  %v571_v20 = vpop.permute.xlu0 %570  ;;  %v543_v23 = vpop.permute.xlu1 %542  ;;  %v1275_v31 = vrot.slane %v1261_v5, %v2733_v44  ;;  %v1345_v5 = vcombine.high %v1341_v25, %v3329_v61 }
 0x1f3   :  { %v3026_v60 = vrot.slane %v1696_v36, %v2626_v47  ;;  %v1711_v37 = vcombine.low %v1688_v52, %v1703_v35  ;;  %v1712_v39 = vcombine.high %v1688_v52, %v1703_v35  ;;  %v3032_v32 = vrot.slane %v1630_v56, %v2626_v47 }
 0x1f4   :  { %v1645_v38 = vcombine.low %v1622_v59, %v1637_v62  ;;  %v1646_v41 = vcombine.high %v1622_v59, %v1637_v62  ;;  %v1279_v52 = vcombine.high %v1275_v31, %v3329_v61 }
 0x1f5   :  { %v3035_v57 = vrot.slane %v1711_v37, %v2733_v44  ;;  %v1727_v9 = vcombine.low %v3023_v58, %v3026_v60  ;;  %v1728_v46 = vcombine.high %v3023_v58, %v3026_v60  ;;  %1383 = vrot.lane.b32.xlu1 %v1343_v55, %s2248_s18  ;;  %v1661_v47 = vcombine.low %v3029_v28, %v3032_v32 }
 0x1f6   :  { %v3043_v29 = vrot.slane %v1645_v38, %v2733_v44  ;;  %v1662_v3 = vcombine.high %v3029_v28, %v3032_v32  ;;  %1355 = vrot.lane.b32.xlu0 %v1277_v63, %s2248_s18  ;;  %v1660_v16 = vrot.slane %v1646_v41, %v2733_v44  ;;  %v1726_v11 = vrot.slane %v1712_v39, %v2733_v44 }
 0x1f7   :  { %v1743_v17 = vcombine.high %v3035_v57, %v3329_v61  ;;  %v1735_v51 = vrot.slane %v1727_v9, %v2733_v44  ;;  %v1669_v42 = vrot.slane %v1661_v47, %v2733_v44  ;;  %v1742_v39 = vrot.slane %v1728_v46, %v2733_v44 }
 0x1f8   :  { %v1677_v21 = vcombine.high %v3043_v29, %v3329_v61  ;;  %v1744_v34 = vcombine.high %v1726_v11, %v3329_v61  ;;  %v1678_v10 = vcombine.high %v1660_v16, %v3329_v61  ;;  %v1676_v41 = vrot.slane %v1662_v3, %v2733_v44 }
 0x1f9   :  { %1776 = vrot.lane.b32.xlu1 %v1743_v17, %s2246_s15  ;;  %v1745_v59 = vcombine.high %v1735_v51, %v3329_v61  ;;  %v1679_v56 = vcombine.high %v1669_v42, %v3329_v61  ;;  %v1746_v17 = vcombine.high %v1742_v39, %v3329_v61 }
 0x1fa   :  { %1748 = vrot.lane.b32.xlu0 %v1677_v21, %s2246_s15  ;;  %v1680_v58 = vcombine.high %v1676_v41, %v3329_v61  ;;  %s3225_s15 = sld [smem:[#allocation8 + $0xf]] }
 0x1fd   :  { %1359 = vrot.lane.b32.xlu1 %v1268_v4, %s2247_s16 }
 0x1fe   :  { %994 = vrot.lane.b32.xlu0 %v940_v14, %s2249_s19 }
 0x201   :  { %1752 = vrot.lane.b32.xlu1 %v1660_v16, %s2245_s9 }
 0x202   :  { %1387 = vrot.lane.b32.xlu0 %v1334_v19, %s2247_s16 }
 0x205   :  { %998 = vrot.lane.b32.xlu1 %v944_v50, %s2251_s24 }
 0x206   :  { %1780 = vrot.lane.b32.xlu0 %v1726_v11, %s2245_s9  ;;  %s3215_s9 = sld [smem:[#allocation10 + $0x1]] }
 0x209   :  { %1391 = vrot.lane.b32.xlu1 %v1344_v45, %s2250_s22  ;;  %v3077_v54 = vpop.permute.xlu0 %978  ;;  %v1880_v45 = vstv %s3134_s27 }
 0x20a   :  { %v951_v33 = vpop.permute.xlu1 %950  ;;  %1363 = vrot.lane.b32.xlu0 %v1278_v49, %s2250_s22  ;;  %v1939_v49 = vstv %s3138_s28 }
 0x20d   :  { %1784 = vrot.lane.b32.xlu1 %v1744_v34, %s2248_s18  ;;  %v539_v40 = vpop.permute.xlu0 %538  ;;  %v1886_v34 = vstv %s3151_s5 }
 0x20e   :  { %v551_v15 = vpop.permute.xlu1 %550  ;;  %1756 = vrot.lane.b32.xlu0 %v1678_v10, %s2248_s18  ;;  %v594_v22 = vsel %vm593_vm3, %v2807_v43, %v539_v40  ;;  %v1945_v10 = vstv %s3153_s6  ;;  %v2004_v40 = vstv %s3155_s7  ;;  %s2061_s18 = sshll.u32 %s2253_s17, 4  ;;  %s2062_s18 = int_to_ptr.vmem [resolvable:$true] %s2061_s18 }
 0x20f   :  { %v596_v7 = vsel %vm595_vm4, %v594_v22, %v543_v23  ;;  %v1818_v23 = vstv %s3131_s26  ;;  %p2210_p7 = scmp.lt.s32.totalorder %s2062_s18, %s2062_s18 }
 0x211   :  { %1395 = vrot.lane.b32.xlu1 %v1341_v25, %s2249_s19  ;;  %v547_v2 = vpop.permute.xlu0 %546 }
 0x212   :  { %v559_v30 = vpop.permute.xlu1 %558  ;;  %1367 = vrot.lane.b32.xlu0 %v1275_v31, %s2249_s19  ;;  %v598_v43 = vsel %vm597_vm5, %v596_v7, %v547_v2 }
 0x213   :  { %v600_v13 = vsel %vm599_vm6, %v598_v43, %v551_v15 }
 0x215   :  { %1788 = vrot.lane.b32.xlu1 %v1735_v51, %s2247_s16  ;;  %v579_v26 = vpop.permute.xlu0 %578 }
 0x216   :  { %v567_v1 = vpop.permute.xlu1 %566  ;;  %1760 = vrot.lane.b32.xlu0 %v1669_v42, %s2247_s16  ;;  %s3235_s16 = sld [smem:[#allocation10 + $0x3]] }
 0x217   :  { %v607_v27 = vsel %vm593_vm3, %v2847_v6, %v567_v1 }
 0x218   :  { %v608_v12 = vsel %vm595_vm4, %v607_v27, %v571_v20 }
 0x219   :  { %1399 = vrot.lane.b32.xlu1 %v1345_v5, %s2251_s24  ;;  %v587_v36 = vpop.permute.xlu0 %586 }
 0x21a   :  { %v575_v35 = vpop.permute.xlu1 %574  ;;  %1371 = vrot.lane.b32.xlu0 %v1279_v52, %s2251_s24 }
 0x21b   :  { %v609_v55 = vsel %vm597_vm5, %v608_v12, %v575_v35 }
 0x21c   :  { %v610_v6 = vsel %vm599_vm6, %v609_v55, %v579_v26 }
 0x21d   :  { %1792 = vrot.lane.b32.xlu1 %v1745_v59, %s2250_s22  ;;  %v947_v62 = vpop.permute.xlu0 %946 }
 0x21e   :  { %v959_v63 = vpop.permute.xlu1 %958  ;;  %1764 = vrot.lane.b32.xlu0 %v1679_v56, %s2250_s22  ;;  %v1001_v37 = vsel %vm593_vm3, %v2878_v8, %v947_v62 }
 0x21f   :  { %v1002_v38 = vsel %vm595_vm4, %v1001_v37, %v951_v33  ;;  %v1824_v33 = vstv %s3146_s30 }
 0x221   :  { %1796 = vrot.lane.b32.xlu1 %v1742_v39, %s2249_s19  ;;  %v955_v9 = vpop.permute.xlu0 %954 }
 0x222   :  { %v967_v47 = vpop.permute.xlu1 %966  ;;  %1768 = vrot.lane.b32.xlu0 %v1676_v41, %s2249_s19  ;;  %v1003_v8 = vsel %vm597_vm5, %v1002_v38, %v955_v9  ;;  %s2205_s19 = scalar_lea.vmem %s2062_s18, 256 }
 0x223   :  { %v1004_v60 = vsel %vm599_vm6, %v1003_v8, %v959_v63  ;;  %p2206_p6 = scmp.ne.s32.totalorder %s2062_s18, %s2205_s19  ;;  %p2211_p8 = scmp.lt.s32.totalorder %s2205_s19, %s2205_s19 }
 0x225   :  { %1800 = vrot.lane.b32.xlu1 %v1746_v17, %s2251_s24  ;;  %v555_v28 = vpop.permute.xlu0 %554  ;;  %p2212_p9 = por %p2211_p8, %p2210_p7 }
 0x226   :  { %v975_v44 = vpop.permute.xlu1 %974  ;;  %1772 = vrot.lane.b32.xlu0 %v1680_v58, %s2251_s24  ;;  %v602_v61 = vsel %vm601_vm7, %v600_v13, %v555_v28 }
 0x227   :  { %v1008_v32 = vsel %vm593_vm3, %v2913_v24, %v975_v44  ;;  %v604_v3 = vsel %vm603_vm8, %v602_v61, %v559_v30  ;;  %p2213_p10 = pnand %p2212_p9, %p2206_p6 }
 0x228   :  { %v1009_v46 = vsel %vm595_vm4, %v1008_v32, %v3077_v54  ;;  %v1998_v54 = vstv %s3141_s29 }
 0x229   :  { %v563_v21 = vpop.permute.xlu0 %562 }
 0x22a   :  { %v983_v24 = vpop.permute.xlu1 %982  ;;  %v606_v0 = vsel %vm605_vm9, %v604_v3, %v563_v21 }
 0x22b   :  { %v1010_v4 = vsel %vm597_vm5, %v1009_v46, %v983_v24  ;;  %v1819_v25 = vmul.f32 %v1818_v23, %v606_v0  ;;  %v1881_v7 = vmul.f32 %v1880_v45, %v606_v0  ;;  %v1940_v31 = vmul.f32 %v1939_v49, %v606_v0 }
 0x22c   :  { %v1999_v2 = vmul.f32 %v1998_v54, %v606_v0 }
 0x22d   :  { %v963_v16 = vpop.permute.xlu0 %962 }
 0x22e   :  { %v583_v14 = vpop.permute.xlu1 %582  ;;  %v1005_v50 = vsel %vm601_vm7, %v1004_v60, %v963_v16 }
 0x22f   :  { %v611_v19 = vsel %vm601_vm7, %v610_v6, %v583_v14  ;;  %v1006_v20 = vsel %vm603_vm8, %v1005_v50, %v967_v47 }
 0x230   :  { %v612_v11 = vsel %vm603_vm8, %v611_v19, %v587_v36 }
 0x231   :  { %v971_v15 = vpop.permute.xlu0 %970 }
 0x232   :  { %v1007_v22 = vsel %vm605_vm9, %v1006_v20, %v971_v15  ;;  %v591_v5 = vpop.permute.xlu1 %590 }
 0x233   :  { %v1825_v30 = vmul.f32 %v1824_v33, %v1007_v22  ;;  %v1887_v43 = vmul.f32 %v1886_v34, %v1007_v22  ;;  %v1946_v51 = vmul.f32 %v1945_v10, %v1007_v22  ;;  %v2005_v42 = vmul.f32 %v2004_v40, %v1007_v22 }
 0x234   :  { %v613_v41 = vsel %vm605_vm9, %v612_v11, %v591_v5  ;;  %v2252_v5 = vmov 1966171168  }
 0x235   :  { %v3172_v13 = vadd.f32 %v1825_v30, %v1819_v25  ;;  %v3174_v26 = vadd.f32 %v1887_v43, %v1881_v7  ;;  %v3176_v1 = vadd.f32 %v1946_v51, %v1940_v31  ;;  %v3178_v27 = vadd.f32 %v2005_v42, %v1999_v2 }
 0x236   :  { %v1820_v17 = vmul.f32 %v1818_v23, %v613_v41  ;;  %v1882_v44 = vmul.f32 %v1880_v45, %v613_v41  ;;  %v1941_v28 = vmul.f32 %v1939_v49, %v613_v41  ;;  %v2000_v32 = vmul.f32 %v1998_v54, %v613_v41 }
 0x237   :  { %v1830_v43 = vstv %s3201_s0  ;;  %v1892_v51 = vstv %s3203_s1  ;;  %v1904_v41 = vstv %s3215_s9 }
 0x25b   :  { %v1376_v12 = vpop.permute.xlu1 %1375 }
 0x25c   :  { %v1348_v52 = vpop.permute.xlu0 %1347 }
 0x25d   :  { %v1402_v15 = vsel %vm593_vm3, %v2989_v48, %v1348_v52 }
 0x25f   :  { %v1352_v36 = vpop.permute.xlu1 %1351 }
 0x260   :  { %v987_v35 = vpop.permute.xlu0 %986  ;;  %v1403_v25 = vsel %vm595_vm4, %v1402_v15, %v1352_v36  ;;  %v1951_v36 = vstv %s3205_s3 }
 0x261   :  { %v1011_v47 = vsel %vm599_vm6, %v1010_v4, %v987_v35  ;;  %v2010_v35 = vstv %s3207_s8 }
 0x263   :  { %v991_v55 = vpop.permute.xlu1 %990 }
 0x264   :  { %v1380_v59 = vpop.permute.xlu0 %1379  ;;  %v1012_v8 = vsel %vm601_vm7, %v1011_v47, %v991_v55 }
 0x267   :  { %v1384_v56 = vpop.permute.xlu1 %1383 }
 0x268   :  { %v1356_v6 = vpop.permute.xlu0 %1355 }
 0x269   :  { %v1404_v2 = vsel %vm597_vm5, %v1403_v25, %v1356_v6 }
 0x26b   :  { %v3180_v62 = vpop.permute.xlu1 %1776 }
 0x26c   :  { %v3182_v63 = vpop.permute.xlu0 %1748 }
 0x26f   :  { %v1360_v37 = vpop.permute.xlu1 %1359 }
 0x270   :  { %v995_v39 = vpop.permute.xlu0 %994  ;;  %v1405_v48 = vsel %vm599_vm6, %v1404_v2, %v1360_v37  ;;  %v1898_v37 = vstv %s3213_s13 }
 0x271   :  { %v1013_v58 = vsel %vm603_vm8, %v1012_v8, %v995_v39  ;;  %v1842_v39 = vstv %s3211_s11  ;;  %v1957_v8 = vstv %s3219_s12 }
 0x273   :  { %v3184_v38 = vpop.permute.xlu1 %1752 }
 0x274   :  { %v1388_v9 = vpop.permute.xlu0 %1387 }
 0x277   :  { %v999_v60 = vpop.permute.xlu1 %998 }
 0x278   :  { %v1014_v61 = vsel %vm605_vm9, %v1013_v58, %v999_v60  ;;  %v3191_v46 = vpop.permute.xlu0 %1780  ;;  %v1810_v58 = vsel %vm593_vm3, %v3035_v57, %v3180_v62  ;;  %v1803_v60 = vsel %vm593_vm3, %v3043_v29, %v3182_v63 }
 0x279   :  { %v1826_v3 = vmul.f32 %v1824_v33, %v1014_v61  ;;  %v1888_v24 = vmul.f32 %v1886_v34, %v1014_v61  ;;  %v1947_v21 = vmul.f32 %v1945_v10, %v1014_v61  ;;  %v2006_v0 = vmul.f32 %v2004_v40, %v1014_v61 }
 0x27a   :  { %v1409_v33 = vsel %vm593_vm3, %v2982_v53, %v1376_v12  ;;  %v3240_v12 = vunpack.c.l.s4 %v2252_v5  ;;  %v1811_v61 = vsel %vm595_vm4, %v1810_v58, %v3191_v46 }
 0x27b   :  { %v3193_v14 = vadd.f32 %v1826_v3, %v1820_v17  ;;  %v3195_v4 = vadd.f32 %v1888_v24, %v1882_v44  ;;  %v3197_v16 = vadd.f32 %v1947_v21, %v1941_v28  ;;  %v3199_v19 = vadd.f32 %v2006_v0, %v2000_v32  ;;  %v1392_v50 = vpop.permute.xlu1 %1391 }
 0x27c   :  { %v1364_v11 = vpop.permute.xlu0 %1363  ;;  %v1410_v10 = vsel %vm595_vm4, %v1409_v33, %v1380_v59  ;;  %v1836_v59 = vstv %s3209_s10  ;;  %v1963_v17 = vstv %s3222_s14  ;;  %v2016_v44 = vstv %s3225_s15 }
 0x27d   :  { %v1411_v40 = vsel %vm597_vm5, %v1410_v10, %v1384_v56  ;;  %v1406_v52 = vsel %vm601_vm7, %v1405_v48, %v1364_v11  ;;  %v1850_v28 = vunpack.c.0.s8 %v3240_v12  ;;  %v1804_v32 = vsel %vm595_vm4, %v1803_v60, %v3184_v38 }
 0x27e   :  { %v1412_v22 = vsel %vm599_vm6, %v1411_v40, %v1388_v9  ;;  %v2022_v38 = vstv %s3235_s16 }
 0x27f   :  { %v1785_v20 = vpop.permute.xlu1 %1784  ;;  %v1413_v7 = vsel %vm601_vm7, %v1412_v22, %v1392_v50 }
 0x280   :  { %v1757_v23 = vpop.permute.xlu0 %1756  ;;  %v1812_v0 = vsel %vm597_vm5, %v1811_v61, %v1785_v20 }
 0x281   :  { %v1805_v57 = vsel %vm597_vm5, %v1804_v32, %v1757_v23 }
 0x283   :  { %v1396_v45 = vpop.permute.xlu1 %1395 }
 0x284   :  { %v1368_v49 = vpop.permute.xlu0 %1367  ;;  %v1414_v30 = vsel %vm603_vm8, %v1413_v7, %v1396_v45 }
 0x285   :  { %v1407_v56 = vsel %vm603_vm8, %v1406_v52, %v1368_v49 }
 0x287   :  { %v1789_v54 = vpop.permute.xlu1 %1788 }
 0x288   :  { %v1761_v34 = vpop.permute.xlu0 %1760  ;;  %v1813_v63 = vsel %vm599_vm6, %v1812_v0, %v1789_v54 }
 0x289   :  { %v1806_v11 = vsel %vm599_vm6, %v1805_v57, %v1761_v34  ;;  %v3340_v57 = vlaneseq }
 0x28b   :  { %v1400_v53 = vpop.permute.xlu1 %1399  ;;  %vm3294_vm10 = vcmp.lt.s32.totalorder %v3340_v57, 256 }
 0x28c   :  { %v1372_v31 = vpop.permute.xlu0 %1371  ;;  %v1415_v42 = vsel %vm605_vm9, %v1414_v30, %v1400_v53 }
 0x28d   :  { %v1832_v9 = vmul.f32 %v1830_v43, %v1415_v42  ;;  %v1408_v47 = vsel %vm605_vm9, %v1407_v56, %v1372_v31  ;;  %v1894_v3 = vmul.f32 %v1892_v51, %v1415_v42  ;;  %v1953_v24 = vmul.f32 %v1951_v36, %v1415_v42 }
 0x28e   :  { %v2012_v62 = vmul.f32 %v2010_v35, %v1415_v42  ;;  %v1831_v50 = vmul.f32 %v1830_v43, %v1408_v47  ;;  %v1893_v49 = vmul.f32 %v1892_v51, %v1408_v47  ;;  %v1952_v33 = vmul.f32 %v1951_v36, %v1408_v47 }
 0x28f   :  { %v1793_v55 = vpop.permute.xlu1 %1792  ;;  %v1834_v45 = vadd.f32 %v1832_v9, %v3193_v14  ;;  %v2011_v46 = vmul.f32 %v2010_v35, %v1408_v47  ;;  %v1896_v40 = vadd.f32 %v1894_v3, %v3195_v4  ;;  %v1955_v20 = vadd.f32 %v1953_v24, %v3197_v16 }
 0x290   :  { %v1765_v6 = vpop.permute.xlu0 %1764  ;;  %v1814_v10 = vsel %vm601_vm7, %v1813_v63, %v1793_v55  ;;  %v2014_v54 = vadd.f32 %v2012_v62, %v3199_v19  ;;  %v1833_v34 = vadd.f32 %v1831_v50, %v3172_v13  ;;  %v1895_v2 = vadd.f32 %v1893_v49, %v3174_v26 }
 0x291   :  { %v1807_v23 = vsel %vm601_vm7, %v1806_v11, %v1765_v6  ;;  %v1954_v30 = vadd.f32 %v1952_v33, %v3176_v1  ;;  %v2013_v43 = vadd.f32 %v2011_v46, %v3178_v27  ;;  %v1853_v47 = vsub.s32 %v1850_v28, %v2615_v18 }
 0x293   :  { %v1797_v21 = vpop.permute.xlu1 %1796 }
 0x294   :  { %v1769_v29 = vpop.permute.xlu0 %1768  ;;  %v1815_v15 = vsel %vm603_vm8, %v1814_v10, %v1797_v21 }
 0x295   :  { %v1808_v14 = vsel %vm603_vm8, %v1807_v23, %v1769_v29 }
 0x297   :  { %v1801_v22 = vpop.permute.xlu1 %1800 }
 0x298   :  { %v1816_v53 = vsel %vm605_vm9, %v1815_v15, %v1801_v22  ;;  %v1773_v25 = vpop.permute.xlu0 %1772 }
 0x299   :  { %v1838_v7 = vmul.f32 %v1836_v59, %v1816_v53  ;;  %v1900_v31 = vmul.f32 %v1898_v37, %v1816_v53  ;;  %v1959_v4 = vmul.f32 %v1957_v8, %v1816_v53  ;;  %v2018_v16 = vmul.f32 %v2016_v44, %v1816_v53 }
 0x29a   :  { %v1809_v19 = vsel %vm605_vm9, %v1808_v14, %v1773_v25 }
 0x29b   :  { %v1840_v13 = vadd.f32 %v1838_v7, %v1834_v45  ;;  %v1902_v48 = vadd.f32 %v1900_v31, %v1896_v40  ;;  %v1961_v51 = vadd.f32 %v1959_v4, %v1955_v20  ;;  %v2020_v42 = vadd.f32 %v2018_v16, %v2014_v54 }
 0x29c   :  { %v1837_v5 = vmul.f32 %v1836_v59, %v1809_v19  ;;  %v1899_v12 = vmul.f32 %v1898_v37, %v1809_v19  ;;  %v1958_v52 = vmul.f32 %v1957_v8, %v1809_v19  ;;  %v2017_v36 = vmul.f32 %v2016_v44, %v1809_v19 }
 0x29d   :  { %v1844_v35 = vadd.f32 %v1842_v39, %v1840_v13  ;;  %v1906_v26 = vadd.f32 %v1904_v41, %v1902_v48  ;;  %v1965_v55 = vadd.f32 %v1963_v17, %v1961_v51  ;;  %v2024_v1 = vadd.f32 %v2022_v38, %v2020_v42 }
 0x29e   :  { %v1839_v56 = vadd.f32 %v1837_v5, %v1833_v34  ;;  %v1901_v27 = vadd.f32 %v1899_v12, %v1895_v2  ;;  %v1960_v6 = vadd.f32 %v1958_v52, %v1954_v30  ;;  %v2019_v9 = vadd.f32 %v2017_v36, %v2013_v43 }
 0x2a0   :  { %v1843_v58 = vadd.f32 %v1842_v39, %v1839_v56  ;;  %v1905_v60 = vadd.f32 %v1904_v41, %v1901_v27  ;;  %v1964_v59 = vadd.f32 %v1963_v17, %v1960_v6  ;;  %v2023_v37 = vadd.f32 %v2022_v38, %v2019_v9 }
 0x2a2   :  { %v1847_v8 = vcombine.low %v1843_v58, %v1844_v35  ;;  %v1909_v44 = vcombine.low %v1905_v60, %v1906_v26  ;;  %v1968_v32 = vcombine.low %v1964_v59, %v1965_v55  ;;  %v2027_v61 = vcombine.low %v2023_v37, %v2024_v1 }
 0x2a4   :  { %v1854_v3 = vrot.slane %v1847_v8, %v1853_v47  ;;  %v1916_v24 = vrot.slane %v1909_v44, %v1853_v47  ;;  %v1975_v21 = vrot.slane %v1968_v32, %v1853_v47  ;;  %v2034_v0 = vrot.slane %v2027_v61, %v1853_v47 }
 0x2a6   :  { %v1855_v18 = vcombine.high %v1854_v3, %v1854_v3  ;;  %v1862_v28 = vrot.slane %v1854_v3, %v1853_v47  ;;  %v1917_v39 = vcombine.high %v1916_v24, %v1916_v24  ;;  %v1924_v50 = vrot.slane %v1916_v24, %v1853_v47 }
 0x2a7   :  { %v1976_v41 = vcombine.high %v1975_v21, %v1975_v21  ;;  %v1983_v17 = vrot.slane %v1975_v21, %v1853_v47  ;;  %v2035_v29 = vcombine.high %v2034_v0, %v2034_v0  ;;  %v2042_v63 = vrot.slane %v2034_v0, %v1853_v47 }
 0x2a8   :  { %v1869_v11 = vrot.slane %v1855_v18, %v1853_v47  ;;  %1876 = vst.msk [vmem:[#allocation11] ss:$4 sm:$0x3] %vm3294_vm10, %v1862_v28  ;;  %v1931_v45 = vrot.slane %v1917_v39, %v1853_v47  ;;  %1935 = vst.msk [vmem:[#allocation11 + $0x1] ss:$4 sm:$0x3] %vm3294_vm10, %v1924_v50 }
 0x2a9   :  { %v1990_v38 = vrot.slane %v1976_v41, %v1853_v47  ;;  %1994 = vst.msk [vmem:[#allocation11 + $0x2] ss:$4 sm:$0x3] %vm3294_vm10, %v1983_v17  ;;  %v2049_v49 = vrot.slane %v2035_v29, %v1853_v47  ;;  %2053 = vst.msk [vmem:[#allocation11 + $0x3] ss:$4 sm:$0x3] %vm3294_vm10, %v2042_v63 }
 0x2aa   :  { %1878 = vst.msk [vmem:[#allocation11 + $0x8] ss:$4 sm:$0x3] %vm3294_vm10, %v1869_v11  ;;  %1937 = vst.msk [vmem:[#allocation11 + $0x9] ss:$4 sm:$0x3] %vm3294_vm10, %v1931_v45 }
 0x2ab   :  { %1996 = vst.msk [vmem:[#allocation11 + $0xa] ss:$4 sm:$0x3] %vm3294_vm10, %v1990_v38  ;;  %2055 = vst.msk [vmem:[#allocation11 + $0xb] ss:$4 sm:$0x3] %vm3294_vm10, %v2049_v49 }
 0x2ac   :  { %2216 = shalt.err (!%p2213_p10)
}
 0x2ad   :  { %2067 = dma.vmem_to_hbm [thread:$0]  %s2062_s18, 256, %s3324_s4, [#allocation5], %s2235_s2, %s2235_s2, %s2236_s23  }
 0x2ae   :  { %2231 = dma.done.wait [#allocation5], 256  }
 0x2af   :  { %2232 = vsyncadd [#allocation5], 4294967040 }
 0x2b0   :  { %2071 = vsyncpa [#allocation4], 1 }
 0x2b1   :  { %2072 = vsyncpa [#allocation5], 1 }
 0x2b2   :  { %2073 = vsyncpa [#allocation6], 1 }
 0x2b3   :  { %2074 = vsyncpa [#allocation9], 1 }

</bundles_post_ra>
